<compile_context>
chip_gen: v5e
topology: v5e:2x2
jax: 0.10.0
libtpu: 0.0.40
codegen_flags: <defaults>
</compile_context>

<pallas_src>
import functools

import jax
import jax.numpy as jnp
from jax import lax
from jax.experimental import pallas as pl
from jax.experimental.pallas import tpu as pltpu

NEG_INF = -1e30   # stands in for float('-inf'); exp() underflows to exactly 0.0 in f32
LN_EPS = 1e-5     # torch.nn.LayerNorm default


# ----------------------------- in-kernel helpers -----------------------------

def _erf_f32(x):
    # Abramowitz & Stegun 7.1.26, |abs err| <= 1.5e-7 (fp32-level match to exact erf)
    a1, a2, a3, a4, a5 = (0.254829592, -0.284496736, 1.421413741,
                          -1.453152027, 1.061405429)
    p = 0.3275911
    ax = jnp.abs(x)
    t = 1.0 / (1.0 + p * ax)
    poly = ((((a5 * t + a4) * t + a3) * t + a2) * t + a1) * t
    y = 1.0 - poly * jnp.exp(-ax * ax)
    return jnp.where(x >= 0, y, -y)


def _gelu_exact(x):
    # matches torch.nn.GELU() (erf-based)
    return 0.5 * x * (1.0 + _erf_f32(x * 0.7071067811865476))


def _layernorm(x, w, b):
    mu = jnp.mean(x, axis=-1, keepdims=True)
    var = jnp.mean((x - mu) ** 2, axis=-1, keepdims=True)
    return (x - mu) * lax.rsqrt(var + LN_EPS) * w + b


# --------------------- PromptLearner.forward (Pallas) ------------------------

def _assemble_prompts_kernel(pre_ref, ctx_ref, suf_ref, out_ref):
    n_pre = pre_ref.shape[1]
    n_ctx = ctx_ref.shape[1]
    out_ref[:, :n_pre, :] = pre_ref[...]
    out_ref[:, n_pre:n_pre + n_ctx, :] = ctx_ref[...]
    out_ref[:, n_pre + n_ctx:, :] = suf_ref[...]


def prompt_learner_forward(token_prefix, ctx, token_suffix, *, class_block=None):
    """prompts = cat([token_prefix, ctx, token_suffix], dim=1) per class.

    Exactly PromptLearner.forward for class-specific ctx / class_token_position
    'pre': the name_lens split in the reference code re-concatenates suffix in
    its original order, so it is a no-op.
    """
    # TODO(synk): n_flp > 0 / num_patch_prompt patch-prompt interleave is host-side
    # list bookkeeping over buffers (no compute); not translated to a kernel.
    n_cls, n_pre, D = token_prefix.shape
    n_ctx = ctx.shape[1]
    n_suf = token_suffix.shape[1]
    L0 = n_pre + n_ctx + n_suf

    # Biggest class tile that divides n_cls (all classes by default): one big
    # DMA per operand, no per-class grid-step overhead.
    cb = n_cls if class_block is None else max(1, min(class_block, n_cls))
    while n_cls % cb:
        cb -= 1
    grid = (n_cls // cb,)

    return pl.pallas_call(
        _assemble_prompts_kernel,
        out_shape=jax.ShapeDtypeStruct((n_cls, L0, D), jnp.float32),
        grid=grid,
        in_specs=[pl.BlockSpec((cb, n_pre, D), lambda i: (i, 0, 0)),
                  pl.BlockSpec((cb, n_ctx, D), lambda i: (i, 0, 0)),
                  pl.BlockSpec((cb, n_suf, D), lambda i: (i, 0, 0))],
        out_specs=pl.BlockSpec((cb, L0, D), lambda i: (i, 0, 0)),
        compiler_params=pltpu.CompilerParams(dimension_semantics=("parallel",)),
    )(token_prefix, ctx, token_suffix)


# -------------- fused text tower: all layers + projection head ---------------

def _encoder_kernel(n_heads, hd,
                    x_ref, pad_ref, causal_ref,
                    lnf_w_ref, lnf_b_ref, proj_ref,
                    ln1w_ref, ln1b_ref, wqkv_ref, bqkv_ref, wo_ref, bo_ref,
                    ln2w_ref, ln2b_ref, w1_ref, b1_ref, w2_ref, b2_ref,
                    o_ref, x_sc, mask_sc):
    layer = pl.program_id(1)
    n_layers = pl.num_programs(1)
    L, D = x_sc.shape
    scale = 1.0 / (hd ** 0.5)   # nn.MultiheadAttention scaling

    # --- per-batch init: load x, build the (L,L) additive mask once ---
    @pl.when(layer == 0)
    def _init():
        x_sc[...] = x_ref[0]
        is_cls_row = lax.broadcasted_iota(jnp.int32, (L, L), 0) == (L - 1)
        # causal mask everywhere; cls padding mask only on the last query row
        mask_sc[...] = causal_ref[...] + jnp.where(is_cls_row, pad_ref[0], 0.0)

    x = x_sc[...]          # (L, D) residual stream, resident across layers
    mask = mask_sc[...]    # (L, L)

    # --- multi-head self-attention (pre-LN), fused QKV + fused out-proj ---
    h = _layernorm(x, ln1w_ref[0], ln1b_ref[0])
    qkv = jnp.dot(h, wqkv_ref[0], preferred_element_type=jnp.float32) + bqkv_ref[0]
    q_all = qkv[:, :D]
    k_all = qkv[:, D:2 * D]
    v_all = qkv[:, 2 * D:]

    heads = []
    for hh in range(n_heads):           # only the tiny (L,hd) attention core per head
        lo, hi = hh * hd, (hh + 1) * hd
        q = q_all[:, lo:hi]
        k = k_all[:, lo:hi]
        v = v_all[:, lo:hi]
        s = lax.dot_general(q, k, (((1,), (1,)), ((), ())),
                            preferred_element_type=jnp.float32) * scale + mask
        s = s - jnp.max(s, axis=-1, keepdims=True)
        p = jnp.exp(s)
        p = p * pl.reciprocal(jnp.sum(p, axis=-1, keepdims=True), approx=True)
        heads.append(jnp.dot(p, v, preferred_element_type=jnp.float32))
    o_heads = jnp.concatenate(heads, axis=-1)                          # (L, D)
    x = x + jnp.dot(o_heads, wo_ref[0],
                    preferred_element_type=jnp.float32) + bo_ref[0]

    # --- MLP (pre-LN) ---
    h2 = _layernorm(x, ln2w_ref[0], ln2b_ref[0])
    m = jnp.dot(h2, w1_ref[0], preferred_element_type=jnp.float32) + b1_ref[0]
    m = _gelu_exact(m)
    x = x + jnp.dot(m, w2_ref[0], preferred_element_type=jnp.float32) + b2_ref[0]
    x_sc[...] = x

    # --- fused head: final LN -> text_projection -> L2 normalize (cls token) ---
    @pl.when(layer == n_layers - 1)
    def _head():
        pooled = x[L - 1:L, :]                                         # (1, D)
        hp = _layernorm(pooled, lnf_w_ref[...], lnf_b_ref[...])
        y = jnp.dot(hp, proj_ref[...], preferred_element_type=jnp.float32)  # (1, P)
        inv = lax.rsqrt(jnp.maximum(jnp.sum(y * y, axis=-1, keepdims=True), 1e-24))
        o_ref[0] = y * inv                                             # F.normalize(dim=-1)


def fused_text_encoder(x, pad, causal, enc, n_heads):
    B, L, D = x.shape
    P = enc["text_proj"].shape[1]
    n_layers = enc["wqkv"].shape[0]
    hd = D // n_heads

    layer_names = ("ln1_w", "ln1_b", "wqkv", "bqkv", "wo", "bo",
                   "ln2_w", "ln2_b", "w1", "b1", "w2", "b2")
    layer_ws = [enc[name] for name in layer_names]

    def lspec(arr):
        nd = arr.ndim
        # stacked per-layer weights: block over the leading layer axis
        return pl.BlockSpec((1,) + arr.shape[1:],
                            lambda b, l, _nd=nd: (l,) + (0,) * (_nd - 1))

    in_specs = (
        [pl.BlockSpec((1, L, D), lambda b, l: (b, 0, 0)),   # x (constant along layers)
         pl.BlockSpec((1, 1, L), lambda b, l: (b, 0, 0)),   # per-batch cls/pad row
         pl.BlockSpec((L, L), lambda b, l: (0, 0)),         # shared causal mask
         pl.BlockSpec((1, D), lambda b, l: (0, 0)),         # ln_final weight
         pl.BlockSpec((1, D), lambda b, l: (0, 0)),         # ln_final bias
         pl.BlockSpec((D, P), lambda b, l: (0, 0))]         # text projection
        + [lspec(w) for w in layer_ws])

    out = pl.pallas_call(
        functools.partial(_encoder_kernel, n_heads, hd),
        out_shape=jax.ShapeDtypeStruct((B, 1, P), jnp.float32),
        grid=(B, n_layers),                                  # batch outer, layers inner
        in_specs=in_specs,
        out_specs=pl.BlockSpec((1, 1, P), lambda b, l: (b, 0, 0)),
        scratch_shapes=[pltpu.VMEM((L, D), jnp.float32),     # resident residual stream
                        pltpu.VMEM((L, L), jnp.float32)],    # combined additive mask
        compiler_params=pltpu.CompilerParams(
            dimension_semantics=("parallel", "arbitrary"),
            vmem_limit_bytes=32 * 1024 * 1024),
    )(x, pad, causal, enc["ln_f_w"], enc["ln_f_b"], enc["text_proj"], *layer_ws)
    return out[:, 0, :]


# ------------------------------- glue / masks --------------------------------

def build_causal_mask(n):
    # mask.fill_(-inf).triu_(1)
    r = jnp.arange(n)
    return jnp.where(r[None, :] > r[:, None], NEG_INF, 0.0).astype(jnp.float32)


def build_cls_pad_row(tokenized, seq_len):
    # Only query row seq_len-1 (the appended cls token) differs per batch:
    # additive 0 for kept key positions, -inf for padding.
    B = tokenized.shape[0]
    text = tokenized[:, :-1]                                        # (B, seq_len-1)
    keep = jnp.concatenate([jnp.ones((B, 1), bool), text != 0], axis=1)   # (B, L)
    row = jnp.where(keep, 0.0, NEG_INF).astype(jnp.float32)
    return row[:, None, :]                                          # (B, 1, L)


def text_encoder_forward(enc, prompts, tokenized_prompts, n_heads):
    B, L0, D = prompts.shape
    cls = jnp.broadcast_to(enc["cls_emb"][None, None, :], (B, 1, D))
    x = jnp.concatenate([prompts[:, :-1, :], cls], axis=1)          # (B, L, D)
    L = x.shape[1]
    x = x + enc["pos_emb"][:L][None]
    pad = build_cls_pad_row(tokenized_prompts, L)                   # (B, 1, L)
    causal = enc["attn_mask"][:L, :L]                               # (L, L)
    return fused_text_encoder(x, pad, causal, enc, n_heads)


# ------------------------------- parameter init ------------------------------

def init_prompt_learner(key, *, n_cls, n_ctx, prompt_len, D):
    k1, k2, k3 = jax.random.split(key, 3)
    std = 0.02
    token_prefix = (std * jax.random.normal(k1, (n_cls, 1, D))).astype(jnp.float32)
    ctx = (std * jax.random.normal(k2, (n_cls, n_ctx, D))).astype(jnp.float32)
    n_suf = prompt_len - 1 - n_ctx
    token_suffix = (std * jax.random.normal(k3, (n_cls, n_suf, D))).astype(jnp.float32)
    return token_prefix, ctx, token_suffix


def init_encoder_params(key, *, D, H, n_layers, mlp, ctx_len, proj_dim):
    ks = jax.random.split(key, 5 + n_layers)

    def norm(k, shape, scale=0.02):
        return (scale * jax.random.normal(k, shape)).astype(jnp.float32)

    enc = {
        "pos_emb": norm(ks[0], (ctx_len, D)),
        "cls_emb": norm(ks[1], (D,)),
        "ln_f_w": (jnp.ones((1, D), jnp.float32) + norm(ks[2], (1, D))),
        "ln_f_b": norm(ks[3], (1, D)),
        "text_proj": norm(ks[4], (D, proj_dim)),
        "attn_mask": build_causal_mask(ctx_len),
    }
    names = ("ln1_w", "ln1_b", "wqkv", "bqkv", "wo", "bo",
             "ln2_w", "ln2_b", "w1", "b1", "w2", "b2")
    stacks = {n: [] for n in names}
    for i in range(n_layers):
        lk = jax.random.split(ks[5 + i], 12)
        stacks["ln1_w"].append(jnp.ones((1, D), jnp.float32) + norm(lk[0], (1, D)))
        stacks["ln1_b"].append(norm(lk[1], (1, D)))
        # fused QKV: columns ordered [q heads | k heads | v heads], head-major
        stacks["wqkv"].append(norm(lk[2], (D, 3 * D)))
        stacks["bqkv"].append(norm(lk[3], (1, 3 * D)))
        stacks["wo"].append(norm(lk[4], (D, D)))
        stacks["bo"].append(norm(lk[5], (1, D)))
        stacks["ln2_w"].append(jnp.ones((1, D), jnp.float32) + norm(lk[6], (1, D)))
        stacks["ln2_b"].append(norm(lk[7], (1, D)))
        stacks["w1"].append(norm(lk[8], (D, mlp)))
        stacks["b1"].append(norm(lk[9], (1, mlp)))
        stacks["w2"].append(norm(lk[10], (mlp, D)))
        stacks["b2"].append(norm(lk[11], (1, D)))
    for n in names:
        enc[n] = jnp.stack(stacks[n], axis=0)
    return enc


# ----------------------------------- main -------------------------------------

if __name__ == "__main__":
    # small but lane-dense toy shapes (D, mlp, proj multiples of 128)
    N_CLS, N_CTX, PROMPT_LEN = 2, 2, 8
    D, H, N_LAYERS, MLP, CTX_LEN, PROJ = 128, 4, 2, 256, 128, 128

    key = jax.random.PRNGKey(0)
    kp, ke = jax.random.split(key)
    token_prefix, ctx, token_suffix = init_prompt_learner(
        kp, n_cls=N_CLS, n_ctx=N_CTX, prompt_len=PROMPT_LEN, D=D)
    enc = init_encoder_params(ke, D=D, H=H, n_layers=N_LAYERS, mlp=MLP,
                              ctx_len=CTX_LEN, proj_dim=PROJ)

    # tokenized prompts (ids, 0 = padding) matching "<bos> X X name... <eos> pad..."
    tokenized_prompts = jnp.array(
        [[49406, 343, 343, 11, 22, 33, 49407, 0],
         [49406, 343, 343, 11, 49407, 0, 0, 0]], dtype=jnp.int32)

    @jax.jit
    def forward(token_prefix, ctx, token_suffix, enc, tokenized):
        prompts = prompt_learner_forward(token_prefix, ctx, token_suffix)
        embeds = text_encoder_forward(enc, prompts, tokenized, n_heads=H)
        return prompts, embeds

    prompts, embeds = forward(token_prefix, ctx, token_suffix, enc,
                              tokenized_prompts)
    prompts, embeds = jax.block_until_ready((prompts, embeds))

    assert prompts.shape == (N_CLS, PROMPT_LEN, D) and prompts.dtype == jnp.float32
    assert embeds.shape == (N_CLS, PROJ) and embeds.dtype == jnp.float32
    assert bool(jnp.all(jnp.isfinite(prompts)))
    assert bool(jnp.all(jnp.isfinite(embeds)))
    print("KERNEL_OK")
</pallas_src>

<mosaic_0001>
module attributes {stable_mosaic.version = 11 : i64} {
  func.func @_assemble_prompts_kernel(%arg0: i32, %arg1: memref<2x1x128xf32, #tpu.memory_space<vmem>>, %arg2: memref<2x2x128xf32, #tpu.memory_space<vmem>>, %arg3: memref<2x5x128xf32, #tpu.memory_space<vmem>>, %arg4: memref<2x8x128xf32, #tpu.memory_space<vmem>>) attributes {dimension_semantics = [#tpu.dimension_semantics<parallel>], iteration_bounds = array<i64: 1>, scalar_prefetch = 0 : i64, scratch_operands = 0 : i64, tpu.core_type = #tpu.core_type<tc>, window_params = [{transform_indices = @transform_0, window_bounds = array<i64: 2, 1, 128>}, {transform_indices = @transform_1, window_bounds = array<i64: 2, 2, 128>}, {transform_indices = @transform_2, window_bounds = array<i64: 2, 5, 128>}, {transform_indices = @transform_3, window_bounds = array<i64: 2, 8, 128>}]} {
    %c0 = arith.constant 0 : index
    %c0_0 = arith.constant 0 : index
    %c0_1 = arith.constant 0 : index
    %0 = vector.load %arg1[%c0, %c0_0, %c0_1] : memref<2x1x128xf32, #tpu.memory_space<vmem>>, vector<2x1x128xf32>
    %c0_2 = arith.constant 0 : index
    %c0_3 = arith.constant 0 : index
    %c0_4 = arith.constant 0 : index
    %1 = vector.load %arg4[%c0_2, %c0_3, %c0_4] : memref<2x8x128xf32, #tpu.memory_space<vmem>>, vector<2x1x128xf32>
    tpu.vector_store %arg4[%c0_2, %c0_3, %c0_4], %0 {strides = array<i32>} : memref<2x8x128xf32, #tpu.memory_space<vmem>>, vector<2x1x128xf32>,
    %c0_5 = arith.constant 0 : index
    %c0_6 = arith.constant 0 : index
    %c0_7 = arith.constant 0 : index
    %2 = vector.load %arg2[%c0_5, %c0_6, %c0_7] : memref<2x2x128xf32, #tpu.memory_space<vmem>>, vector<2x2x128xf32>
    %c0_8 = arith.constant 0 : index
    %c1 = arith.constant 1 : index
    %c0_9 = arith.constant 0 : index
    %3 = vector.load %arg4[%c0_8, %c1, %c0_9] : memref<2x8x128xf32, #tpu.memory_space<vmem>>, vector<2x2x128xf32>
    tpu.vector_store %arg4[%c0_8, %c1, %c0_9], %2 {strides = array<i32>} : memref<2x8x128xf32, #tpu.memory_space<vmem>>, vector<2x2x128xf32>,
    %c0_10 = arith.constant 0 : index
    %c0_11 = arith.constant 0 : index
    %c0_12 = arith.constant 0 : index
    %4 = vector.load %arg3[%c0_10, %c0_11, %c0_12] : memref<2x5x128xf32, #tpu.memory_space<vmem>>, vector<2x5x128xf32>
    %c0_13 = arith.constant 0 : index
    %c3 = arith.constant 3 : index
    %c0_14 = arith.constant 0 : index
    %5 = vector.load %arg4[%c0_13, %c3, %c0_14] : memref<2x8x128xf32, #tpu.memory_space<vmem>>, vector<2x5x128xf32>
    tpu.vector_store %arg4[%c0_13, %c3, %c0_14], %4 {strides = array<i32>} : memref<2x8x128xf32, #tpu.memory_space<vmem>>, vector<2x5x128xf32>,
    return
  }
  func.func @transform_0(%arg0: i32) -> (i32, i32, i32) {
    %c0_i32 = arith.constant 0 : i32
    %c0_i32_0 = arith.constant 0 : i32
    %c0_i32_1 = arith.constant 0 : i32
    return %arg0, %c0_i32, %c0_i32_0 : i32, i32, i32
  }
  func.func @transform_1(%arg0: i32) -> (i32, i32, i32) {
    %c0_i32 = arith.constant 0 : i32
    %c0_i32_0 = arith.constant 0 : i32
    %c0_i32_1 = arith.constant 0 : i32
    return %arg0, %c0_i32, %c0_i32_0 : i32, i32, i32
  }
  func.func @transform_2(%arg0: i32) -> (i32, i32, i32) {
    %c0_i32 = arith.constant 0 : i32
    %c0_i32_0 = arith.constant 0 : i32
    %c0_i32_1 = arith.constant 0 : i32
    return %arg0, %c0_i32, %c0_i32_0 : i32, i32, i32
  }
  func.func @transform_3(%arg0: i32) -> (i32, i32, i32) {
    %c0_i32 = arith.constant 0 : i32
    %c0_i32_0 = arith.constant 0 : i32
    %c0_i32_1 = arith.constant 0 : i32
    return %arg0, %c0_i32, %c0_i32_0 : i32, i32, i32
  }
}

module attributes {stable_mosaic.version = 11 : i64} {
  func.func @_encoder_kernel(%arg0: i32, %arg1: i32, %arg2: memref<1x8x128xf32, #tpu.memory_space<vmem>>, %arg3: memref<1x1x8xf32, #tpu.memory_space<vmem>>, %arg4: memref<8x8xf32, #tpu.memory_space<vmem>>, %arg5: memref<1x128xf32, #tpu.memory_space<vmem>>, %arg6: memref<1x128xf32, #tpu.memory_space<vmem>>, %arg7: memref<128x128xf32, #tpu.memory_space<vmem>>, %arg8: memref<1x1x128xf32, #tpu.memory_space<vmem>>, %arg9: memref<1x1x128xf32, #tpu.memory_space<vmem>>, %arg10: memref<1x128x384xf32, #tpu.memory_space<vmem>>, %arg11: memref<1x1x384xf32, #tpu.memory_space<vmem>>, %arg12: memref<1x128x128xf32, #tpu.memory_space<vmem>>, %arg13: memref<1x1x128xf32, #tpu.memory_space<vmem>>, %arg14: memref<1x1x128xf32, #tpu.memory_space<vmem>>, %arg15: memref<1x1x128xf32, #tpu.memory_space<vmem>>, %arg16: memref<1x128x256xf32, #tpu.memory_space<vmem>>, %arg17: memref<1x1x256xf32, #tpu.memory_space<vmem>>, %arg18: memref<1x256x128xf32, #tpu.memory_space<vmem>>, %arg19: memref<1x1x128xf32, #tpu.memory_space<vmem>>, %arg20: memref<1x1x128xf32, #tpu.memory_space<vmem>>, %arg21: memref<8x128xf32, #tpu.memory_space<vmem>>, %arg22: memref<8x8xf32, #tpu.memory_space<vmem>>) attributes {dimension_semantics = [#tpu.dimension_semantics<parallel>, #tpu.dimension_semantics<arbitrary>], iteration_bounds = array<i64: 2, 2>, scalar_prefetch = 0 : i64, scratch_operands = 2 : i64, tpu.core_type = #tpu.core_type<tc>, window_params = [{transform_indices = @transform_0, window_bounds = array<i64: 1, 8, 128>}, {transform_indices = @transform_1, window_bounds = array<i64: 1, 1, 8>}, {pipeline_mode = #tpu.pipeline_mode<synchronous>, transform_indices = @transform_2, window_bounds = array<i64: 8, 8>}, {pipeline_mode = #tpu.pipeline_mode<synchronous>, transform_indices = @transform_3, window_bounds = array<i64: 1, 128>}, {pipeline_mode = #tpu.pipeline_mode<synchronous>, transform_indices = @transform_4, window_bounds = array<i64: 1, 128>}, {pipeline_mode = #tpu.pipeline_mode<synchronous>, transform_indices = @transform_5, window_bounds = array<i64: 128, 128>}, {transform_indices = @transform_6, window_bounds = array<i64: 1, 1, 128>}, {transform_indices = @transform_7, window_bounds = array<i64: 1, 1, 128>}, {transform_indices = @transform_8, window_bounds = array<i64: 1, 128, 384>}, {transform_indices = @transform_9, window_bounds = array<i64: 1, 1, 384>}, {transform_indices = @transform_10, window_bounds = array<i64: 1, 128, 128>}, {transform_indices = @transform_11, window_bounds = array<i64: 1, 1, 128>}, {transform_indices = @transform_12, window_bounds = array<i64: 1, 1, 128>}, {transform_indices = @transform_13, window_bounds = array<i64: 1, 1, 128>}, {transform_indices = @transform_14, window_bounds = array<i64: 1, 128, 256>}, {transform_indices = @transform_15, window_bounds = array<i64: 1, 1, 256>}, {transform_indices = @transform_16, window_bounds = array<i64: 1, 256, 128>}, {transform_indices = @transform_17, window_bounds = array<i64: 1, 1, 128>}, {transform_indices = @transform_18, window_bounds = array<i64: 1, 1, 128>}]} {
    %c0_i32 = arith.constant 0 : i32
    %0 = arith.cmpi eq, %arg1, %c0_i32 : i32
    %1 = arith.extui %0 : i1 to i32
    %c0_i32_0 = arith.constant 0 : i32
    %2 = arith.cmpi ne, %1, %c0_i32_0 : i32
    scf.if %2 {
      %c0_91 = arith.constant 0 : index
      %c0_92 = arith.constant 0 : index
      %c0_93 = arith.constant 0 : index
      %207 = vector.load %arg2[%c0_91, %c0_92, %c0_93] : memref<1x8x128xf32, #tpu.memory_space<vmem>>, vector<1x8x128xf32>
      %208 = vector.shape_cast %207 : vector<1x8x128xf32> to vector<8x128xf32>
      %c0_94 = arith.constant 0 : index
      %c0_95 = arith.constant 0 : index
      %209 = vector.load %arg21[%c0_94, %c0_95] : memref<8x128xf32, #tpu.memory_space<vmem>>, vector<8x128xf32>
      tpu.vector_store %arg21[%c0_94, %c0_95], %208 {strides = array<i32>} : memref<8x128xf32, #tpu.memory_space<vmem>>, vector<8x128xf32>,
      %210 = tpu.iota {dimensions = array<i32: 0>} : vector<8x8xi32>
      %c7_i32 = arith.constant 7 : i32
      %211 = vector.broadcast %c7_i32 : i32 to vector<8x8xi32>
      %212 = arith.cmpi eq, %210, %211 : vector<8x8xi32>
      %c0_96 = arith.constant 0 : index
      %c0_97 = arith.constant 0 : index
      %213 = vector.load %arg4[%c0_96, %c0_97] : memref<8x8xf32, #tpu.memory_space<vmem>>, vector<8x8xf32>
      %c0_98 = arith.constant 0 : index
      %c0_99 = arith.constant 0 : index
      %c0_100 = arith.constant 0 : index
      %214 = vector.load %arg3[%c0_98, %c0_99, %c0_100] : memref<1x1x8xf32, #tpu.memory_space<vmem>>, vector<1x1x8xf32>
      %215 = vector.shape_cast %214 : vector<1x1x8xf32> to vector<1x8xf32>
      %cst_101 = arith.constant 0.000000e+00 : f32
      %216 = vector.shape_cast %215 : vector<1x8xf32> to vector<1x8xf32>
      %217 = vector.broadcast %216 : vector<1x8xf32> to vector<8x8xf32>
      %218 = vector.broadcast %cst_101 : f32 to vector<8x8xf32>
      %219 = arith.select %212, %217, %218 : vector<8x8xi1>, vector<8x8xf32>
      %220 = arith.addf %213, %219 : vector<8x8xf32>
      %c0_102 = arith.constant 0 : index
      %c0_103 = arith.constant 0 : index
      %221 = vector.load %arg22[%c0_102, %c0_103] : memref<8x8xf32, #tpu.memory_space<vmem>>, vector<8x8xf32>
      tpu.vector_store %arg22[%c0_102, %c0_103], %220 {strides = array<i32>} : memref<8x8xf32, #tpu.memory_space<vmem>>, vector<8x8xf32>,
    } else {
    }
    %c0 = arith.constant 0 : index
    %c0_1 = arith.constant 0 : index
    %3 = vector.load %arg21[%c0, %c0_1] : memref<8x128xf32, #tpu.memory_space<vmem>>, vector<8x128xf32>
    %c0_2 = arith.constant 0 : index
    %c0_3 = arith.constant 0 : index
    %4 = vector.load %arg22[%c0_2, %c0_3] : memref<8x8xf32, #tpu.memory_space<vmem>>, vector<8x8xf32>
    %c0_4 = arith.constant 0 : index
    %c0_5 = arith.constant 0 : index
    %c0_6 = arith.constant 0 : index
    %5 = vector.load %arg8[%c0_4, %c0_5, %c0_6] : memref<1x1x128xf32, #tpu.memory_space<vmem>>, vector<1x1x128xf32>
    %6 = vector.shape_cast %5 : vector<1x1x128xf32> to vector<1x128xf32>
    %c0_7 = arith.constant 0 : index
    %c0_8 = arith.constant 0 : index
    %c0_9 = arith.constant 0 : index
    %7 = vector.load %arg9[%c0_7, %c0_8, %c0_9] : memref<1x1x128xf32, #tpu.memory_space<vmem>>, vector<1x1x128xf32>
    %8 = vector.shape_cast %7 : vector<1x1x128xf32> to vector<1x128xf32>
    %cst = arith.constant dense<0.000000e+00> : vector<8xf32>
    %9 = vector.multi_reduction <add>, %3, %cst [1] : vector<8x128xf32> to vector<8xf32>
    %10 = vector.shape_cast %9 : vector<8xf32> to vector<8x1xf32>
    %cst_10 = arith.constant 1.280000e+02 : f32
    %11 = vector.broadcast %cst_10 : f32 to vector<8x1xf32>
    %12 = arith.divf %10, %11 : vector<8x1xf32>
    %13 = vector.broadcast %12 : vector<8x1xf32> to vector<8x128xf32>
    %14 = arith.subf %3, %13 : vector<8x128xf32>
    %15 = arith.mulf %14, %14 : vector<8x128xf32>
    %cst_11 = arith.constant dense<0.000000e+00> : vector<8xf32>
    %16 = vector.multi_reduction <add>, %15, %cst_11 [1] : vector<8x128xf32> to vector<8xf32>
    %17 = vector.shape_cast %16 : vector<8xf32> to vector<8x1xf32>
    %cst_12 = arith.constant 1.280000e+02 : f32
    %18 = vector.broadcast %cst_12 : f32 to vector<8x1xf32>
    %19 = arith.divf %17, %18 : vector<8x1xf32>
    %20 = vector.broadcast %12 : vector<8x1xf32> to vector<8x128xf32>
    %21 = arith.subf %3, %20 : vector<8x128xf32>
    %cst_13 = arith.constant 9.99999974E-6 : f32
    %22 = vector.broadcast %cst_13 : f32 to vector<8x1xf32>
    %23 = arith.addf %19, %22 : vector<8x1xf32>
    %24 = math.rsqrt %23 : vector<8x1xf32>
    %25 = vector.broadcast %24 : vector<8x1xf32> to vector<8x128xf32>
    %26 = arith.mulf %21, %25 : vector<8x128xf32>
    %27 = vector.broadcast %6 : vector<1x128xf32> to vector<8x128xf32>
    %28 = arith.mulf %26, %27 : vector<8x128xf32>
    %29 = vector.broadcast %8 : vector<1x128xf32> to vector<8x128xf32>
    %30 = arith.addf %28, %29 : vector<8x128xf32>
    %c0_14 = arith.constant 0 : index
    %c0_15 = arith.constant 0 : index
    %c0_16 = arith.constant 0 : index
    %31 = vector.load %arg10[%c0_14, %c0_15, %c0_16] : memref<1x128x384xf32, #tpu.memory_space<vmem>>, vector<1x128x384xf32>
    %32 = vector.shape_cast %31 : vector<1x128x384xf32> to vector<128x384xf32>
    %cst_17 = arith.constant dense<0.000000e+00> : vector<8x384xf32>
    %33 = tpu.matmul %30, %32, %cst_17 {dimension_numbers = #tpu.dot_dimension_numbers<[1], [0], [0], [1], [0, 0, 1, 1], [], []>} : vector<8x128xf32>, vector<128x384xf32>, vector<8x384xf32> -> vector<8x384xf32>
    %c0_18 = arith.constant 0 : index
    %c0_19 = arith.constant 0 : index
    %c0_20 = arith.constant 0 : index
    %34 = vector.load %arg11[%c0_18, %c0_19, %c0_20] : memref<1x1x384xf32, #tpu.memory_space<vmem>>, vector<1x1x384xf32>
    %35 = vector.shape_cast %34 : vector<1x1x384xf32> to vector<1x384xf32>
    %36 = vector.broadcast %35 : vector<1x384xf32> to vector<8x384xf32>
    %37 = arith.addf %33, %36 : vector<8x384xf32>
    %38 = vector.extract_strided_slice %37 {offsets = [0, 0], sizes = [8, 128], strides = [1, 1]} : vector<8x384xf32> to vector<8x128xf32>
    %39 = vector.extract_strided_slice %37 {offsets = [0, 128], sizes = [8, 128], strides = [1, 1]} : vector<8x384xf32> to vector<8x128xf32>
    %40 = vector.extract_strided_slice %37 {offsets = [0, 256], sizes = [8, 128], strides = [1, 1]} : vector<8x384xf32> to vector<8x128xf32>
    %41 = vector.extract_strided_slice %38 {offsets = [0, 0], sizes = [8, 32], strides = [1, 1]} : vector<8x128xf32> to vector<8x32xf32>
    %42 = vector.extract_strided_slice %39 {offsets = [0, 0], sizes = [8, 32], strides = [1, 1]} : vector<8x128xf32> to vector<8x32xf32>
    %43 = vector.extract_strided_slice %40 {offsets = [0, 0], sizes = [8, 32], strides = [1, 1]} : vector<8x128xf32> to vector<8x32xf32>
    %cst_21 = arith.constant dense<0.000000e+00> : vector<8x8xf32>
    %44 = tpu.matmul %41, %42, %cst_21 {dimension_numbers = #tpu.dot_dimension_numbers<[1], [1], [0], [0], [0, 0, 1, 0], [], []>} : vector<8x32xf32>, vector<8x32xf32>, vector<8x8xf32> -> vector<8x8xf32>
    %cst_22 = arith.constant 0.176776692 : f32
    %45 = vector.broadcast %cst_22 : f32 to vector<8x8xf32>
    %46 = arith.mulf %44, %45 : vector<8x8xf32>
    %47 = arith.addf %46, %4 : vector<8x8xf32>
    %cst_23 = arith.constant dense<0xFF800000> : vector<8xf32>
    %48 = vector.multi_reduction <maximumf>, %47, %cst_23 [1] : vector<8x8xf32> to vector<8xf32>
    %49 = vector.shape_cast %48 : vector<8xf32> to vector<8x1xf32>
    %50 = vector.broadcast %49 : vector<8x1xf32> to vector<8x8xf32>
    %51 = arith.subf %47, %50 : vector<8x8xf32>
    %52 = math.exp %51 : vector<8x8xf32>
    %cst_24 = arith.constant dense<0.000000e+00> : vector<8xf32>
    %53 = vector.multi_reduction <add>, %52, %cst_24 [1] : vector<8x8xf32> to vector<8xf32>
    %54 = vector.shape_cast %53 : vector<8xf32> to vector<8x1xf32>
    %55 = tpu.reciprocal %54 {approx = true} : vector<8x1xf32> -> vector<8x1xf32>
    %56 = vector.broadcast %55 : vector<8x1xf32> to vector<8x8xf32>
    %57 = arith.mulf %52, %56 : vector<8x8xf32>
    %cst_25 = arith.constant dense<0.000000e+00> : vector<8x32xf32>
    %58 = tpu.matmul %57, %43, %cst_25 {dimension_numbers = #tpu.dot_dimension_numbers<[1], [0], [0], [1], [0, 0, 1, 1], [], []>} : vector<8x8xf32>, vector<8x32xf32>, vector<8x32xf32> -> vector<8x32xf32>
    %59 = vector.extract_strided_slice %38 {offsets = [0, 32], sizes = [8, 32], strides = [1, 1]} : vector<8x128xf32> to vector<8x32xf32>
    %60 = vector.extract_strided_slice %39 {offsets = [0, 32], sizes = [8, 32], strides = [1, 1]} : vector<8x128xf32> to vector<8x32xf32>
    %61 = vector.extract_strided_slice %40 {offsets = [0, 32], sizes = [8, 32], strides = [1, 1]} : vector<8x128xf32> to vector<8x32xf32>
    %cst_26 = arith.constant dense<0.000000e+00> : vector<8x8xf32>
    %62 = tpu.matmul %59, %60, %cst_26 {dimension_numbers = #tpu.dot_dimension_numbers<[1], [1], [0], [0], [0, 0, 1, 0], [], []>} : vector<8x32xf32>, vector<8x32xf32>, vector<8x8xf32> -> vector<8x8xf32>
    %cst_27 = arith.constant 0.176776692 : f32
    %63 = vector.broadcast %cst_27 : f32 to vector<8x8xf32>
    %64 = arith.mulf %62, %63 : vector<8x8xf32>
    %65 = arith.addf %64, %4 : vector<8x8xf32>
    %cst_28 = arith.constant dense<0xFF800000> : vector<8xf32>
    %66 = vector.multi_reduction <maximumf>, %65, %cst_28 [1] : vector<8x8xf32> to vector<8xf32>
    %67 = vector.shape_cast %66 : vector<8xf32> to vector<8x1xf32>
    %68 = vector.broadcast %67 : vector<8x1xf32> to vector<8x8xf32>
    %69 = arith.subf %65, %68 : vector<8x8xf32>
    %70 = math.exp %69 : vector<8x8xf32>
    %cst_29 = arith.constant dense<0.000000e+00> : vector<8xf32>
    %71 = vector.multi_reduction <add>, %70, %cst_29 [1] : vector<8x8xf32> to vector<8xf32>
    %72 = vector.shape_cast %71 : vector<8xf32> to vector<8x1xf32>
    %73 = tpu.reciprocal %72 {approx = true} : vector<8x1xf32> -> vector<8x1xf32>
    %74 = vector.broadcast %73 : vector<8x1xf32> to vector<8x8xf32>
    %75 = arith.mulf %70, %74 : vector<8x8xf32>
    %cst_30 = arith.constant dense<0.000000e+00> : vector<8x32xf32>
    %76 = tpu.matmul %75, %61, %cst_30 {dimension_numbers = #tpu.dot_dimension_numbers<[1], [0], [0], [1], [0, 0, 1, 1], [], []>} : vector<8x8xf32>, vector<8x32xf32>, vector<8x32xf32> -> vector<8x32xf32>
    %77 = vector.extract_strided_slice %38 {offsets = [0, 64], sizes = [8, 32], strides = [1, 1]} : vector<8x128xf32> to vector<8x32xf32>
    %78 = vector.extract_strided_slice %39 {offsets = [0, 64], sizes = [8, 32], strides = [1, 1]} : vector<8x128xf32> to vector<8x32xf32>
    %79 = vector.extract_strided_slice %40 {offsets = [0, 64], sizes = [8, 32], strides = [1, 1]} : vector<8x128xf32> to vector<8x32xf32>
    %cst_31 = arith.constant dense<0.000000e+00> : vector<8x8xf32>
    %80 = tpu.matmul %77, %78, %cst_31 {dimension_numbers = #tpu.dot_dimension_numbers<[1], [1], [0], [0], [0, 0, 1, 0], [], []>} : vector<8x32xf32>, vector<8x32xf32>, vector<8x8xf32> -> vector<8x8xf32>
    %cst_32 = arith.constant 0.176776692 : f32
    %81 = vector.broadcast %cst_32 : f32 to vector<8x8xf32>
    %82 = arith.mulf %80, %81 : vector<8x8xf32>
    %83 = arith.addf %82, %4 : vector<8x8xf32>
    %cst_33 = arith.constant dense<0xFF800000> : vector<8xf32>
    %84 = vector.multi_reduction <maximumf>, %83, %cst_33 [1] : vector<8x8xf32> to vector<8xf32>
    %85 = vector.shape_cast %84 : vector<8xf32> to vector<8x1xf32>
    %86 = vector.broadcast %85 : vector<8x1xf32> to vector<8x8xf32>
    %87 = arith.subf %83, %86 : vector<8x8xf32>
    %88 = math.exp %87 : vector<8x8xf32>
    %cst_34 = arith.constant dense<0.000000e+00> : vector<8xf32>
    %89 = vector.multi_reduction <add>, %88, %cst_34 [1] : vector<8x8xf32> to vector<8xf32>
    %90 = vector.shape_cast %89 : vector<8xf32> to vector<8x1xf32>
    %91 = tpu.reciprocal %90 {approx = true} : vector<8x1xf32> -> vector<8x1xf32>
    %92 = vector.broadcast %91 : vector<8x1xf32> to vector<8x8xf32>
    %93 = arith.mulf %88, %92 : vector<8x8xf32>
    %cst_35 = arith.constant dense<0.000000e+00> : vector<8x32xf32>
    %94 = tpu.matmul %93, %79, %cst_35 {dimension_numbers = #tpu.dot_dimension_numbers<[1], [0], [0], [1], [0, 0, 1, 1], [], []>} : vector<8x8xf32>, vector<8x32xf32>, vector<8x32xf32> -> vector<8x32xf32>
    %95 = vector.extract_strided_slice %38 {offsets = [0, 96], sizes = [8, 32], strides = [1, 1]} : vector<8x128xf32> to vector<8x32xf32>
    %96 = vector.extract_strided_slice %39 {offsets = [0, 96], sizes = [8, 32], strides = [1, 1]} : vector<8x128xf32> to vector<8x32xf32>
    %97 = vector.extract_strided_slice %40 {offsets = [0, 96], sizes = [8, 32], strides = [1, 1]} : vector<8x128xf32> to vector<8x32xf32>
    %cst_36 = arith.constant dense<0.000000e+00> : vector<8x8xf32>
    %98 = tpu.matmul %95, %96, %cst_36 {dimension_numbers = #tpu.dot_dimension_numbers<[1], [1], [0], [0], [0, 0, 1, 0], [], []>} : vector<8x32xf32>, vector<8x32xf32>, vector<8x8xf32> -> vector<8x8xf32>
    %cst_37 = arith.constant 0.176776692 : f32
    %99 = vector.broadcast %cst_37 : f32 to vector<8x8xf32>
    %100 = arith.mulf %98, %99 : vector<8x8xf32>
    %101 = arith.addf %100, %4 : vector<8x8xf32>
    %cst_38 = arith.constant dense<0xFF800000> : vector<8xf32>
    %102 = vector.multi_reduction <maximumf>, %101, %cst_38 [1] : vector<8x8xf32> to vector<8xf32>
    %103 = vector.shape_cast %102 : vector<8xf32> to vector<8x1xf32>
    %104 = vector.broadcast %103 : vector<8x1xf32> to vector<8x8xf32>
    %105 = arith.subf %101, %104 : vector<8x8xf32>
    %106 = math.exp %105 : vector<8x8xf32>
    %cst_39 = arith.constant dense<0.000000e+00> : vector<8xf32>
    %107 = vector.multi_reduction <add>, %106, %cst_39 [1] : vector<8x8xf32> to vector<8xf32>
    %108 = vector.shape_cast %107 : vector<8xf32> to vector<8x1xf32>
    %109 = tpu.reciprocal %108 {approx = true} : vector<8x1xf32> -> vector<8x1xf32>
    %110 = vector.broadcast %109 : vector<8x1xf32> to vector<8x8xf32>
    %111 = arith.mulf %106, %110 : vector<8x8xf32>
    %cst_40 = arith.constant dense<0.000000e+00> : vector<8x32xf32>
    %112 = tpu.matmul %111, %97, %cst_40 {dimension_numbers = #tpu.dot_dimension_numbers<[1], [0], [0], [1], [0, 0, 1, 1], [], []>} : vector<8x8xf32>, vector<8x32xf32>, vector<8x32xf32> -> vector<8x32xf32>
    %113 = tpu.concatenate %58, %76, %94, %112 in 1 : vector<8x32xf32>, vector<8x32xf32>, vector<8x32xf32>, vector<8x32xf32> -> vector<8x128xf32>
    %c0_41 = arith.constant 0 : index
    %c0_42 = arith.constant 0 : index
    %c0_43 = arith.constant 0 : index
    %114 = vector.load %arg12[%c0_41, %c0_42, %c0_43] : memref<1x128x128xf32, #tpu.memory_space<vmem>>, vector<1x128x128xf32>
    %115 = vector.shape_cast %114 : vector<1x128x128xf32> to vector<128x128xf32>
    %cst_44 = arith.constant dense<0.000000e+00> : vector<8x128xf32>
    %116 = tpu.matmul %113, %115, %cst_44 {dimension_numbers = #tpu.dot_dimension_numbers<[1], [0], [0], [1], [0, 0, 1, 1], [], []>} : vector<8x128xf32>, vector<128x128xf32>, vector<8x128xf32> -> vector<8x128xf32>
    %117 = arith.addf %3, %116 : vector<8x128xf32>
    %c0_45 = arith.constant 0 : index
    %c0_46 = arith.constant 0 : index
    %c0_47 = arith.constant 0 : index
    %118 = vector.load %arg13[%c0_45, %c0_46, %c0_47] : memref<1x1x128xf32, #tpu.memory_space<vmem>>, vector<1x1x128xf32>
    %119 = vector.shape_cast %118 : vector<1x1x128xf32> to vector<1x128xf32>
    %120 = vector.broadcast %119 : vector<1x128xf32> to vector<8x128xf32>
    %121 = arith.addf %117, %120 : vector<8x128xf32>
    %c0_48 = arith.constant 0 : index
    %c0_49 = arith.constant 0 : index
    %c0_50 = arith.constant 0 : index
    %122 = vector.load %arg14[%c0_48, %c0_49, %c0_50] : memref<1x1x128xf32, #tpu.memory_space<vmem>>, vector<1x1x128xf32>
    %123 = vector.shape_cast %122 : vector<1x1x128xf32> to vector<1x128xf32>
    %c0_51 = arith.constant 0 : index
    %c0_52 = arith.constant 0 : index
    %c0_53 = arith.constant 0 : index
    %124 = vector.load %arg15[%c0_51, %c0_52, %c0_53] : memref<1x1x128xf32, #tpu.memory_space<vmem>>, vector<1x1x128xf32>
    %125 = vector.shape_cast %124 : vector<1x1x128xf32> to vector<1x128xf32>
    %cst_54 = arith.constant dense<0.000000e+00> : vector<8xf32>
    %126 = vector.multi_reduction <add>, %121, %cst_54 [1] : vector<8x128xf32> to vector<8xf32>
    %127 = vector.shape_cast %126 : vector<8xf32> to vector<8x1xf32>
    %cst_55 = arith.constant 1.280000e+02 : f32
    %128 = vector.broadcast %cst_55 : f32 to vector<8x1xf32>
    %129 = arith.divf %127, %128 : vector<8x1xf32>
    %130 = vector.broadcast %129 : vector<8x1xf32> to vector<8x128xf32>
    %131 = arith.subf %121, %130 : vector<8x128xf32>
    %132 = arith.mulf %131, %131 : vector<8x128xf32>
    %cst_56 = arith.constant dense<0.000000e+00> : vector<8xf32>
    %133 = vector.multi_reduction <add>, %132, %cst_56 [1] : vector<8x128xf32> to vector<8xf32>
    %134 = vector.shape_cast %133 : vector<8xf32> to vector<8x1xf32>
    %cst_57 = arith.constant 1.280000e+02 : f32
    %135 = vector.broadcast %cst_57 : f32 to vector<8x1xf32>
    %136 = arith.divf %134, %135 : vector<8x1xf32>
    %137 = vector.broadcast %129 : vector<8x1xf32> to vector<8x128xf32>
    %138 = arith.subf %121, %137 : vector<8x128xf32>
    %cst_58 = arith.constant 9.99999974E-6 : f32
    %139 = vector.broadcast %cst_58 : f32 to vector<8x1xf32>
    %140 = arith.addf %136, %139 : vector<8x1xf32>
    %141 = math.rsqrt %140 : vector<8x1xf32>
    %142 = vector.broadcast %141 : vector<8x1xf32> to vector<8x128xf32>
    %143 = arith.mulf %138, %142 : vector<8x128xf32>
    %144 = vector.broadcast %123 : vector<1x128xf32> to vector<8x128xf32>
    %145 = arith.mulf %143, %144 : vector<8x128xf32>
    %146 = vector.broadcast %125 : vector<1x128xf32> to vector<8x128xf32>
    %147 = arith.addf %145, %146 : vector<8x128xf32>
    %c0_59 = arith.constant 0 : index
    %c0_60 = arith.constant 0 : index
    %c0_61 = arith.constant 0 : index
    %148 = vector.load %arg16[%c0_59, %c0_60, %c0_61] : memref<1x128x256xf32, #tpu.memory_space<vmem>>, vector<1x128x256xf32>
    %149 = vector.shape_cast %148 : vector<1x128x256xf32> to vector<128x256xf32>
    %cst_62 = arith.constant dense<0.000000e+00> : vector<8x256xf32>
    %150 = tpu.matmul %147, %149, %cst_62 {dimension_numbers = #tpu.dot_dimension_numbers<[1], [0], [0], [1], [0, 0, 1, 1], [], []>} : vector<8x128xf32>, vector<128x256xf32>, vector<8x256xf32> -> vector<8x256xf32>
    %c0_63 = arith.constant 0 : index
    %c0_64 = arith.constant 0 : index
    %c0_65 = arith.constant 0 : index
    %151 = vector.load %arg17[%c0_63, %c0_64, %c0_65] : memref<1x1x256xf32, #tpu.memory_space<vmem>>, vector<1x1x256xf32>
    %152 = vector.shape_cast %151 : vector<1x1x256xf32> to vector<1x256xf32>
    %153 = vector.broadcast %152 : vector<1x256xf32> to vector<8x256xf32>
    %154 = arith.addf %150, %153 : vector<8x256xf32>
    %cst_66 = arith.constant 5.000000e-01 : f32
    %155 = vector.broadcast %cst_66 : f32 to vector<8x256xf32>
    %156 = arith.mulf %155, %154 : vector<8x256xf32>
    %cst_67 = arith.constant 0.707106769 : f32
    %157 = vector.broadcast %cst_67 : f32 to vector<8x256xf32>
    %158 = arith.mulf %154, %157 : vector<8x256xf32>
    %159 = math.absf %158 : vector<8x256xf32>
    %cst_68 = arith.constant 0.327591091 : f32
    %160 = vector.broadcast %cst_68 : f32 to vector<8x256xf32>
    %161 = arith.mulf %160, %159 : vector<8x256xf32>
    %cst_69 = arith.constant 1.000000e+00 : f32
    %162 = vector.broadcast %cst_69 : f32 to vector<8x256xf32>
    %163 = arith.addf %162, %161 : vector<8x256xf32>
    %cst_70 = arith.constant 1.000000e+00 : f32
    %164 = vector.broadcast %cst_70 : f32 to vector<8x256xf32>
    %165 = arith.divf %164, %163 : vector<8x256xf32>
    %cst_71 = arith.constant 1.06140542 : f32
    %166 = vector.broadcast %cst_71 : f32 to vector<8x256xf32>
    %167 = arith.mulf %166, %165 : vector<8x256xf32>
    %cst_72 = arith.constant -1.45315206 : f32
    %168 = vector.broadcast %cst_72 : f32 to vector<8x256xf32>
    %169 = arith.addf %167, %168 : vector<8x256xf32>
    %170 = arith.mulf %169, %165 : vector<8x256xf32>
    %cst_73 = arith.constant 1.42141378 : f32
    %171 = vector.broadcast %cst_73 : f32 to vector<8x256xf32>
    %172 = arith.addf %170, %171 : vector<8x256xf32>
    %173 = arith.mulf %172, %165 : vector<8x256xf32>
    %cst_74 = arith.constant -0.284496725 : f32
    %174 = vector.broadcast %cst_74 : f32 to vector<8x256xf32>
    %175 = arith.addf %173, %174 : vector<8x256xf32>
    %176 = arith.mulf %175, %165 : vector<8x256xf32>
    %cst_75 = arith.constant 0.254829586 : f32
    %177 = vector.broadcast %cst_75 : f32 to vector<8x256xf32>
    %178 = arith.addf %176, %177 : vector<8x256xf32>
    %179 = arith.mulf %178, %165 : vector<8x256xf32>
    %cst_76 = arith.constant 0.000000e+00 : f32
    %180 = vector.broadcast %cst_76 : f32 to vector<8x256xf32>
    %181 = arith.subf %180, %159 : vector<8x256xf32>
    %182 = arith.mulf %181, %159 : vector<8x256xf32>
    %183 = math.exp %182 : vector<8x256xf32>
    %184 = arith.mulf %179, %183 : vector<8x256xf32>
    %cst_77 = arith.constant 1.000000e+00 : f32
    %185 = vector.broadcast %cst_77 : f32 to vector<8x256xf32>
    %186 = arith.subf %185, %184 : vector<8x256xf32>
    %cst_78 = arith.constant 0.000000e+00 : f32
    %187 = vector.broadcast %cst_78 : f32 to vector<8x256xf32>
    %188 = arith.cmpf oge, %158, %187 : vector<8x256xf32>
    %cst_79 = arith.constant 0.000000e+00 : f32
    %189 = vector.broadcast %cst_79 : f32 to vector<8x256xf32>
    %190 = arith.subf %189, %186 : vector<8x256xf32>
    %191 = arith.select %188, %186, %190 : vector<8x256xi1>, vector<8x256xf32>
    %cst_80 = arith.constant 1.000000e+00 : f32
    %192 = vector.broadcast %cst_80 : f32 to vector<8x256xf32>
    %193 = arith.addf %192, %191 : vector<8x256xf32>
    %194 = arith.mulf %156, %193 : vector<8x256xf32>
    %c0_81 = arith.constant 0 : index
    %c0_82 = arith.constant 0 : index
    %c0_83 = arith.constant 0 : index
    %195 = vector.load %arg18[%c0_81, %c0_82, %c0_83] : memref<1x256x128xf32, #tpu.memory_space<vmem>>, vector<1x256x128xf32>
    %196 = vector.shape_cast %195 : vector<1x256x128xf32> to vector<256x128xf32>
    %cst_84 = arith.constant dense<0.000000e+00> : vector<8x128xf32>
    %197 = tpu.matmul %194, %196, %cst_84 {dimension_numbers = #tpu.dot_dimension_numbers<[1], [0], [0], [1], [0, 0, 1, 1], [], []>} : vector<8x256xf32>, vector<256x128xf32>, vector<8x128xf32> -> vector<8x128xf32>
    %198 = arith.addf %121, %197 : vector<8x128xf32>
    %c0_85 = arith.constant 0 : index
    %c0_86 = arith.constant 0 : index
    %c0_87 = arith.constant 0 : index
    %199 = vector.load %arg19[%c0_85, %c0_86, %c0_87] : memref<1x1x128xf32, #tpu.memory_space<vmem>>, vector<1x1x128xf32>
    %200 = vector.shape_cast %199 : vector<1x1x128xf32> to vector<1x128xf32>
    %201 = vector.broadcast %200 : vector<1x128xf32> to vector<8x128xf32>
    %202 = arith.addf %198, %201 : vector<8x128xf32>
    %c0_88 = arith.constant 0 : index
    %c0_89 = arith.constant 0 : index
    %203 = vector.load %arg21[%c0_88, %c0_89] : memref<8x128xf32, #tpu.memory_space<vmem>>, vector<8x128xf32>
    tpu.vector_store %arg21[%c0_88, %c0_89], %202 {strides = array<i32>} : memref<8x128xf32, #tpu.memory_space<vmem>>, vector<8x128xf32>,
    %c1_i32 = arith.constant 1 : i32
    %204 = arith.cmpi eq, %arg1, %c1_i32 : i32
    %205 = arith.extui %204 : i1 to i32
    %c0_i32_90 = arith.constant 0 : i32
    %206 = arith.cmpi ne, %205, %c0_i32_90 : i32
    scf.if %206 {
      %207 = vector.extract_strided_slice %202 {offsets = [7, 0], sizes = [1, 128], strides = [1, 1]} : vector<8x128xf32> to vector<1x128xf32>
      %c0_91 = arith.constant 0 : index
      %c0_92 = arith.constant 0 : index
      %208 = vector.load %arg5[%c0_91, %c0_92] : memref<1x128xf32, #tpu.memory_space<vmem>>, vector<1x128xf32>
      %c0_93 = arith.constant 0 : index
      %c0_94 = arith.constant 0 : index
      %209 = vector.load %arg6[%c0_93, %c0_94] : memref<1x128xf32, #tpu.memory_space<vmem>>, vector<1x128xf32>
      %cst_95 = arith.constant dense<0.000000e+00> : vector<1xf32>
      %210 = vector.multi_reduction <add>, %207, %cst_95 [1] : vector<1x128xf32> to vector<1xf32>
      %211 = vector.shape_cast %210 : vector<1xf32> to vector<1x1xf32>
      %cst_96 = arith.constant 1.280000e+02 : f32
      %212 = vector.broadcast %cst_96 : f32 to vector<1x1xf32>
      %213 = arith.divf %211, %212 : vector<1x1xf32>
      %214 = vector.broadcast %213 : vector<1x1xf32> to vector<1x128xf32>
      %215 = arith.subf %207, %214 : vector<1x128xf32>
      %216 = arith.mulf %215, %215 : vector<1x128xf32>
      %cst_97 = arith.constant dense<0.000000e+00> : vector<1xf32>
      %217 = vector.multi_reduction <add>, %216, %cst_97 [1] : vector<1x128xf32> to vector<1xf32>
      %218 = vector.shape_cast %217 : vector<1xf32> to vector<1x1xf32>
      %cst_98 = arith.constant 1.280000e+02 : f32
      %219 = vector.broadcast %cst_98 : f32 to vector<1x1xf32>
      %220 = arith.divf %218, %219 : vector<1x1xf32>
      %221 = vector.broadcast %213 : vector<1x1xf32> to vector<1x128xf32>
      %222 = arith.subf %207, %221 : vector<1x128xf32>
      %cst_99 = arith.constant 9.99999974E-6 : f32
      %223 = vector.broadcast %cst_99 : f32 to vector<1x1xf32>
      %224 = arith.addf %220, %223 : vector<1x1xf32>
      %225 = math.rsqrt %224 : vector<1x1xf32>
      %226 = vector.broadcast %225 : vector<1x1xf32> to vector<1x128xf32>
      %227 = arith.mulf %222, %226 : vector<1x128xf32>
      %228 = arith.mulf %227, %208 : vector<1x128xf32>
      %229 = arith.addf %228, %209 : vector<1x128xf32>
      %c0_100 = arith.constant 0 : index
      %c0_101 = arith.constant 0 : index
      %230 = vector.load %arg7[%c0_100, %c0_101] : memref<128x128xf32, #tpu.memory_space<vmem>>, vector<128x128xf32>
      %cst_102 = arith.constant dense<0.000000e+00> : vector<1x128xf32>
      %231 = tpu.matmul %229, %230, %cst_102 {dimension_numbers = #tpu.dot_dimension_numbers<[1], [0], [0], [1], [0, 0, 1, 1], [], []>} : vector<1x128xf32>, vector<128x128xf32>, vector<1x128xf32> -> vector<1x128xf32>
      %232 = arith.mulf %231, %231 : vector<1x128xf32>
      %cst_103 = arith.constant dense<0.000000e+00> : vector<1xf32>
      %233 = vector.multi_reduction <add>, %232, %cst_103 [1] : vector<1x128xf32> to vector<1xf32>
      %234 = vector.shape_cast %233 : vector<1xf32> to vector<1x1xf32>
      %cst_104 = arith.constant 1.000000e-24 : f32
      %235 = vector.broadcast %cst_104 : f32 to vector<1x1xf32>
      %236 = arith.maximumf %234, %235 : vector<1x1xf32>
      %237 = math.rsqrt %236 : vector<1x1xf32>
      %238 = vector.broadcast %237 : vector<1x1xf32> to vector<1x128xf32>
      %239 = arith.mulf %231, %238 : vector<1x128xf32>
      %c0_105 = arith.constant 0 : index
      %c0_106 = arith.constant 0 : index
      %c0_107 = arith.constant 0 : index
      %240 = vector.load %arg20[%c0_105, %c0_106, %c0_107] : memref<1x1x128xf32, #tpu.memory_space<vmem>>, vector<1x1x128xf32>
      %241 = vector.shape_cast %240 : vector<1x1x128xf32> to vector<1x128xf32>
      %242 = vector.shape_cast %239 : vector<1x128xf32> to vector<1x1x128xf32>
      tpu.vector_store %arg20[%c0_105, %c0_106, %c0_107], %242 {strides = array<i32>} : memref<1x1x128xf32, #tpu.memory_space<vmem>>, vector<1x1x128xf32>,
    } else {
    }
    return
  }
  func.func @transform_0(%arg0: i32, %arg1: i32) -> (i32, i32, i32) {
    %c0_i32 = arith.constant 0 : i32
    %c0_i32_0 = arith.constant 0 : i32
    %c0_i32_1 = arith.constant 0 : i32
    return %arg0, %c0_i32, %c0_i32_0 : i32, i32, i32
  }
  func.func @transform_1(%arg0: i32, %arg1: i32) -> (i32, i32, i32) {
    %c0_i32 = arith.constant 0 : i32
    %c0_i32_0 = arith.constant 0 : i32
    %c0_i32_1 = arith.constant 0 : i32
    return %arg0, %c0_i32, %c0_i32_0 : i32, i32, i32
  }
  func.func @transform_2(%arg0: i32, %arg1: i32) -> (i32, i32) {
    %c0_i32 = arith.constant 0 : i32
    %c0_i32_0 = arith.constant 0 : i32
    %c0_i32_1 = arith.constant 0 : i32
    return %c0_i32, %c0_i32_0 : i32, i32
  }
  func.func @transform_3(%arg0: i32, %arg1: i32) -> (i32, i32) {
    %c0_i32 = arith.constant 0 : i32
    %c0_i32_0 = arith.constant 0 : i32
    %c0_i32_1 = arith.constant 0 : i32
    return %c0_i32, %c0_i32_0 : i32, i32
  }
  func.func @transform_4(%arg0: i32, %arg1: i32) -> (i32, i32) {
    %c0_i32 = arith.constant 0 : i32
    %c0_i32_0 = arith.constant 0 : i32
    %c0_i32_1 = arith.constant 0 : i32
    return %c0_i32, %c0_i32_0 : i32, i32
  }
  func.func @transform_5(%arg0: i32, %arg1: i32) -> (i32, i32) {
    %c0_i32 = arith.constant 0 : i32
    %c0_i32_0 = arith.constant 0 : i32
    %c0_i32_1 = arith.constant 0 : i32
    return %c0_i32, %c0_i32_0 : i32, i32
  }
  func.func @transform_6(%arg0: i32, %arg1: i32) -> (i32, i32, i32) {
    %c0_i32 = arith.constant 0 : i32
    %c0_i32_0 = arith.constant 0 : i32
    %c0_i32_1 = arith.constant 0 : i32
    return %arg1, %c0_i32, %c0_i32_0 : i32, i32, i32
  }
  func.func @transform_7(%arg0: i32, %arg1: i32) -> (i32, i32, i32) {
    %c0_i32 = arith.constant 0 : i32
    %c0_i32_0 = arith.constant 0 : i32
    %c0_i32_1 = arith.constant 0 : i32
    return %arg1, %c0_i32, %c0_i32_0 : i32, i32, i32
  }
  func.func @transform_8(%arg0: i32, %arg1: i32) -> (i32, i32, i32) {
    %c0_i32 = arith.constant 0 : i32
    %c0_i32_0 = arith.constant 0 : i32
    %c0_i32_1 = arith.constant 0 : i32
    return %arg1, %c0_i32, %c0_i32_0 : i32, i32, i32
  }
  func.func @transform_9(%arg0: i32, %arg1: i32) -> (i32, i32, i32) {
    %c0_i32 = arith.constant 0 : i32
    %c0_i32_0 = arith.constant 0 : i32
    %c0_i32_1 = arith.constant 0 : i32
    return %arg1, %c0_i32, %c0_i32_0 : i32, i32, i32
  }
  func.func @transform_10(%arg0: i32, %arg1: i32) -> (i32, i32, i32) {
    %c0_i32 = arith.constant 0 : i32
    %c0_i32_0 = arith.constant 0 : i32
    %c0_i32_1 = arith.constant 0 : i32
    return %arg1, %c0_i32, %c0_i32_0 : i32, i32, i32
  }
  func.func @transform_11(%arg0: i32, %arg1: i32) -> (i32, i32, i32) {
    %c0_i32 = arith.constant 0 : i32
    %c0_i32_0 = arith.constant 0 : i32
    %c0_i32_1 = arith.constant 0 : i32
    return %arg1, %c0_i32, %c0_i32_0 : i32, i32, i32
  }
  func.func @transform_12(%arg0: i32, %arg1: i32) -> (i32, i32, i32) {
    %c0_i32 = arith.constant 0 : i32
    %c0_i32_0 = arith.constant 0 : i32
    %c0_i32_1 = arith.constant 0 : i32
    return %arg1, %c0_i32, %c0_i32_0 : i32, i32, i32
  }
  func.func @transform_13(%arg0: i32, %arg1: i32) -> (i32, i32, i32) {
    %c0_i32 = arith.constant 0 : i32
    %c0_i32_0 = arith.constant 0 : i32
    %c0_i32_1 = arith.constant 0 : i32
    return %arg1, %c0_i32, %c0_i32_0 : i32, i32, i32
  }
  func.func @transform_14(%arg0: i32, %arg1: i32) -> (i32, i32, i32) {
    %c0_i32 = arith.constant 0 : i32
    %c0_i32_0 = arith.constant 0 : i32
    %c0_i32_1 = arith.constant 0 : i32
    return %arg1, %c0_i32, %c0_i32_0 : i32, i32, i32
  }
  func.func @transform_15(%arg0: i32, %arg1: i32) -> (i32, i32, i32) {
    %c0_i32 = arith.constant 0 : i32
    %c0_i32_0 = arith.constant 0 : i32
    %c0_i32_1 = arith.constant 0 : i32
    return %arg1, %c0_i32, %c0_i32_0 : i32, i32, i32
  }
  func.func @transform_16(%arg0: i32, %arg1: i32) -> (i32, i32, i32) {
    %c0_i32 = arith.constant 0 : i32
    %c0_i32_0 = arith.constant 0 : i32
    %c0_i32_1 = arith.constant 0 : i32
    return %arg1, %c0_i32, %c0_i32_0 : i32, i32, i32
  }
  func.func @transform_17(%arg0: i32, %arg1: i32) -> (i32, i32, i32) {
    %c0_i32 = arith.constant 0 : i32
    %c0_i32_0 = arith.constant 0 : i32
    %c0_i32_1 = arith.constant 0 : i32
    return %arg1, %c0_i32, %c0_i32_0 : i32, i32, i32
  }
  func.func @transform_18(%arg0: i32, %arg1: i32) -> (i32, i32, i32) {
    %c0_i32 = arith.constant 0 : i32
    %c0_i32_0 = arith.constant 0 : i32
    %c0_i32_1 = arith.constant 0 : i32
    return %arg0, %c0_i32, %c0_i32_0 : i32, i32, i32
  }
}

</mosaic_0001>

<bundles_post_ra>
// kernel: forward.2
= control target key start
LH: loop header
LB: loop body
LE: loop exit
PB: predicated region body
PF: predicated region fallthrough
CT: control target
= control target key end

     0   :  { %s86_s0 = inlined_call_operand.vmem [shape: f32[2,1,128], index: 0, kind: input, shape index: {}]   ;;  %s87_s3 = inlined_call_operand.vmem [shape: f32[2,8,128], index: 3, kind: output, shape index: {}]   ;;  %s88_s1 = inlined_call_operand.vmem [shape: f32[2,2,128], index: 1, kind: input, shape index: {}]   ;;  %s89_s2 = inlined_call_operand.vmem [shape: f32[2,5,128], index: 2, kind: input, shape index: {}]  }
   0x1   :  { %v14_v0 = vld [vmem:[%s86_s0] sm:$0x1]  ;;  %v15_v1 = vld [vmem:[%s86_s0 + $0x1] sm:$0x1]  ;;  %v19_v3 = vld [vmem:[%s88_s1 + $0x2] sm:$0x3] }
   0x2   :  { %v18_v2 = vld [vmem:[%s88_s1] sm:$0x3]  ;;  %16 = vst [vmem:[%s87_s3] sm:$0x1] %v14_v0  ;;  %v23_v5 = vld [vmem:[%s89_s2 + $0x8] sm:$0x1f] }
   0x3   :  { %17 = vst [vmem:[%s87_s3 + $0x8] sm:$0x1] %v15_v1  ;;  %v22_v4 = vld [vmem:[%s89_s2] sm:$0x1f] }
   0x4   :  { %20 = vst [vmem:[%s87_s3 + $0x1] sm:$0x3] %v18_v2 }
   0x5   :  { %21 = vst [vmem:[%s87_s3 + $0x9] sm:$0x3] %v19_v3 }
   0x6   :  { %24 = vst [vmem:[%s87_s3 + $0x3] sm:$0x1f] %v22_v4 }
   0x7   :  { %25 = vst [vmem:[%s87_s3 + $0xb] sm:$0x1f] %v23_v5 }

// kernel: forward.3
= control target key start
LH: loop header
LB: loop body
LE: loop exit
PB: predicated region body
PF: predicated region fallthrough
CT: control target
= control target key end

     0   :  { %s3207_s0 = inlined_call_operand.vmem [shape: f32[2,8,128], index: 0, kind: input, shape index: {}]   ;;  %s3208_s1 = inlined_call_operand.vmem [shape: f32[2,1,8], index: 1, kind: input, shape index: {}]   ;;  %s3209_s2 = inlined_call_operand.vmem [shape: f32[8,8], index: 2, kind: input, shape index: {}]   ;;  %s3210_s3 = inlined_call_operand.vmem [shape: f32[1,128], index: 3, kind: input, shape index: {}]   ;;  %s3211_s4 = inlined_call_operand.vmem [shape: f32[1,128], index: 4, kind: input, shape index: {}]   ;;  %s3212_s5 = inlined_call_operand.hbm [shape: f32[128,128], index: 5, kind: input, shape index: {}]   ;;  %s3213_s6 = inlined_call_operand.vmem [shape: f32[2,1,128], index: 6, kind: input, shape index: {}]   ;;  %s3214_s7 = inlined_call_operand.vmem [shape: f32[2,1,128], index: 7, kind: input, shape index: {}]   ;;  %s3215_s8 = inlined_call_operand.hbm [shape: f32[2,128,384], index: 8, kind: input, shape index: {}]   ;;  %s3216_s9 = inlined_call_operand.vmem [shape: f32[2,1,384], index: 9, kind: input, shape index: {}]   ;;  %s3217_s10 = inlined_call_operand.hbm [shape: f32[2,128,128], index: 10, kind: input, shape index: {}]   ;;  %s3218_s11 = inlined_call_operand.vmem [shape: f32[2,1,128], index: 11, kind: input, shape index: {}]   ;;  %s3219_s12 = inlined_call_operand.vmem [shape: f32[2,1,128], index: 12, kind: input, shape index: {}]   ;;  %s3220_s13 = inlined_call_operand.vmem [shape: f32[2,1,128], index: 13, kind: input, shape index: {}]   ;;  %s3221_s14 = inlined_call_operand.hbm [shape: f32[2,128,256], index: 14, kind: input, shape index: {}]   ;;  %s3222_s15 = inlined_call_operand.vmem [shape: f32[2,1,256], index: 15, kind: input, shape index: {}]   ;;  %s3223_s16 = inlined_call_operand.hbm [shape: f32[2,256,128], index: 16, kind: input, shape index: {}]   ;;  %s3224_s17 = inlined_call_operand.vmem [shape: f32[2,1,128], index: 17, kind: input, shape index: {}]   ;;  %s3225_s18 = inlined_call_operand.hbm [shape: f32[2,1,128], index: 18, kind: output, shape index: {}]  }
   0x1   :  { %3242 = sst [smem:[#allocation33_spill]] %s3207_s0 }
   0x2   :  { %3243 = sst [smem:[#allocation34_spill]] %s3208_s1 }
   0x3   :  { %3244 = sst [smem:[#allocation35_spill]] %s3209_s2 }
   0x4   :  { %3245 = sst [smem:[#allocation36_spill]] %s3210_s3 }
   0x5   :  { %3246 = sst [smem:[#allocation37_spill]] %s3211_s4 }
   0x6   :  { %3247 = sst [smem:[#allocation38_spill]] %s3212_s5 }
   0x7   :  { %3248 = sst [smem:[#allocation39_spill]] %s3213_s6 }
   0x8   :  { %3249 = sst [smem:[#allocation40_spill]] %s3214_s7 }
   0x9   :  { %3250 = sst [smem:[#allocation41_spill]] %s3215_s8 }
   0xa   :  { %3251 = sst [smem:[#allocation42_spill]] %s3216_s9 }
   0xb   :  { %3252 = sst [smem:[#allocation43_spill]] %s3217_s10 }
   0xc   :  { %3253 = sst [smem:[#allocation44_spill]] %s3218_s11 }
   0xd   :  { %3254 = sst [smem:[#allocation45_spill]] %s3219_s12 }
   0xe   :  { %3255 = sst [smem:[#allocation46_spill]] %s3220_s13 }
   0xf   :  { %3256 = sst [smem:[#allocation47_spill]] %s3221_s14 }
  0x10   :  { %3257 = sst [smem:[#allocation48_spill]] %s3222_s15 }
  0x11   :  { %3258 = sst [smem:[#allocation49_spill]] %s3223_s16 }
  0x12   :  { %3259 = sst [smem:[#allocation50_spill]] %s3224_s17 }
  0x13   :  { %3260 = sst [smem:[#allocation51_spill]] %s3225_s18 }
  0x14   :  { %23 = vsyncpa [#allocation5], 0 }
  0x15   :  { %24 = vsyncpa [#allocation8], 0 }
  0x16   :  { %26 = vsyncpa [#allocation8 + $0x1], 0 }
  0x17   :  { %27 = vsyncpa [#allocation11], 0 }
  0x18   :  { %29 = vsyncpa [#allocation11 + $0x1], 0 }
  0x19   :  { %30 = vsyncpa [#allocation6], 0 }
  0x1a   :  { %32 = vsyncpa [#allocation6 + $0x1], 0  ;;  %s2630_s27 = smov 0   ;;  %s2632_s28 = smov 0  }
  0x1b   :  { %s2634_s29 = smov 0   ;;  %s2636_s30 = smov 0  }
  0x1c   :  { %s2638_s0 = smov 0   ;;  %s2640_s19 = smov 0  }
  0x1d   :  { %s2642_s1 = smov 0   ;;  %s2644_s20 = smov 0  }
  0x1e   :  { %s2646_s21 = smov 0   ;;  %s2648_s22 = smov 0  }
  0x1f   :  { %s2650_s2 = smov 0  }
  0x20 LB: > { %3261 = sst [smem:[#allocation18_spill]] %s2482_s27  ;;  %s47_s23 = sadd.s32 1, %s2514_s21  ;;  %s2522_s2 = sphi %s2650_s2, %s38_s2   ;;  %s2518_s22 = sphi %s2648_s22, %s3329_s22   ;;  %s2514_s21 = sphi %s2646_s21, %s3328_s21   ;;  %s2510_s20 = sphi %s2644_s20, %s3327_s20   ;;  %s2506_s1 = sphi %s2642_s1, %s3326_s1   ;;  %s2502_s19 = sphi %s2640_s19, %s3325_s19   ;;  %s2498_s0 = sphi %s2638_s0, %s3324_s0   ;;  %s2494_s30 = sphi %s2636_s30, %s3323_s30   ;;  %s2490_s29 = sphi %s2634_s29, %s3322_s29   ;;  %s2486_s28 = sphi %s2632_s28, %s3331_s28   ;;  %s2482_s27 = sphi %s2630_s27, %s3330_s27  }
  0x21   : > { %3262 = sst [smem:[#allocation19_spill]] %s2490_s29  ;;  %s50_s24 = sadd.s32 1, %s2518_s22 }
  0x22   : > { %3263 = sst [smem:[#allocation20_spill]] %s2498_s0  ;;  %p48_p0 = scmp.ge.s32.totalorder %s47_s23, 2 }
  0x23   : > { %3264 = sst [smem:[#allocation21_spill]] %s2502_s19  ;;  %s245_s25 = sadd.s32 1, %s2502_s19 }
  0x24   : > { %3265 = sst [smem:[#allocation22_spill]] %s2506_s1  ;;  %p252_p1 = scmp.ne.s32.totalorder %s2502_s19, %s2498_s0 }
  0x25   : > { %3266 = sst [smem:[#allocation23_spill]] %s2510_s20  ;;  %p253_p2 = scmp.eq.s32.totalorder %s2522_s2, 0 }
  0x26   : > { %3267 = sst [smem:[#allocation24_spill]] %s2514_s21  ;;  %s3333_s23 = smov (%p48_p0, %s47_s23), 0 }
  0x27   : > { %3268 = sst [smem:[#allocation25_spill]] %s2518_s22  ;;  %s3335_s24 = smov (!%p48_p0, %s50_s24), %s2518_s22 }
  0x28   : > { %3269 = sst [smem:[#allocation26_spill]] %s2522_s2  ;;  %s242_s26 = ssub.s32 %s2514_s21, %s3333_s23 }
  0x29   : > { %3270 = sst [smem:[#allocation27_spill]] %s3333_s23  ;;  %p254_p3 = por %p253_p2, %p252_p1 }
  0x2a   : > { %p52_p4 = scmp.ge.s32.totalorder %s3335_s24, 2  ;;  %p243_p5 = scmp.eq.s32.totalorder %s242_s26, 0 }
  0x2b   : > { %p2097_p6 = scmp.lt.s32.totalorder %s2522_s2, 4  ;;  %s590_s3 = sand.u32 1, %s2522_s2  }
  0x2c   : > { %s3337_s24 = smov (%p52_p4, %s3335_s24), 0  ;;  %s2706_s15 = sand.u32 1, %s2502_s19  }
  0x2d   : > { %3271 = sst [smem:[#allocation28_spill]] %s3337_s24  ;;  %s2057_s17 = smul.u32 384, %s2706_s15 }
  0x2e   : > { %s2700_s18 = scalar_select %p243_p5, %s2502_s19, %s245_s25  }
  0x2f   : > { %p2709_p7 = pnand %p2097_p6, %p254_p3  ;;  %s2058_s26 = smul.u32 384, %s2514_s21 }
  0x30   : > { %3272 = sst [smem:[#allocation29_spill]] %s2700_s18  ;;  %s594_s25 = scalar_lea.vmem [#allocation7], %s2057_s17 }
  0x31   : > { %s3274_s8 = sld [smem:[#allocation41_spill]]  ;;  %s602_s18 = sshll.u32 %s594_s25, 4  ;;  %s603_s18 = int_to_ptr.vmem [resolvable:$true] %s602_s18 }
  0x32   : > { %s2717_s19 = scalar_lea.sflag [#allocation8], %s590_s3  ;;  %s2524_s11 = smov 384  }
  0x33   : > { %s2525_s7 = smov 24   ;;  %s2025_s6 = sshll.u32 %s2706_s15, 8 }
  0x34   : > { %s2055_s1 = sshll.u32 %s2514_s21, 8  ;;  %s3275_s14 = sld [smem:[#allocation47_spill]] }
  0x35   : > { %s663_s17 = scalar_lea.vmem [#allocation10], %s2025_s6  ;;  %s3276_s16 = sld [smem:[#allocation49_spill]] }
  0x36   : > { %s692_s20 = scalar_lea.vmem [#allocation12], %s2025_s6  ;;  %p258_p8 = scmp.ne.s32.totalorder %s2498_s0, %s2494_s30 }
  0x37   : > { %s599_s12 = scalar_lea.hbm %s3274_s8, %s2058_s26  ;;  %s2727_s26 = scalar_lea.sflag [#allocation11], %s590_s3 }
  0x38   : > { %s600_s4 = sshll.u32 %s599_s12, 4  ;;  %s671_s12 = sshll.u32 %s663_s17, 4  ;;  %s601_s4 = int_to_ptr.hbm [resolvable:$true] %s600_s4  ;;  %s672_s12 = int_to_ptr.vmem [resolvable:$true] %s671_s12 }
  0x39   : > { %2082 = dma.hbm_to_vmem [thread:$0]  (!%p2709_p7), %s601_s4, 6144, %s603_s18, %s2717_s19, %s2524_s11, %s2524_s11, %s2525_s7  }
  0x3a   : > { %s668_s9 = scalar_lea.hbm %s3275_s14, %s2055_s1  ;;  %s2526_s4 = smov 256  }
  0x3b   : > { %s669_s23 = sshll.u32 %s668_s9, 4  ;;  %s2527_s7 = smov 16   ;;  %s670_s23 = int_to_ptr.hbm [resolvable:$true] %s669_s23 }
  0x3c   : > { %2088 = dma.hbm_to_vmem [thread:$0]  (!%p2709_p7), %s670_s23, 4096, %s672_s12, %s2727_s26, %s2526_s4, %s2526_s4, %s2527_s7  }
  0x3d   : > { %s697_s18 = scalar_lea.hbm %s3276_s16, %s2055_s1  ;;  %s700_s25 = sshll.u32 %s692_s20, 4  ;;  %s2735_s25 = int_to_ptr.vmem [resolvable:$true] %s700_s25 }
  0x3e   : > { %s698_s9 = sshll.u32 %s697_s18, 4  ;;  %s2740_s3 = sadd.s32 4294967295, %s2522_s2   ;;  %s2737_s9 = int_to_ptr.hbm [resolvable:$true] %s698_s9 }
  0x3f   : > { %s2017_s17 = sadd.s32 4294967294, %s2522_s2   ;;  %p259_p9 = scmp.eq.s32.totalorder %s2740_s3, 0 }
  0x40   : > { %s3277_s1 = ssub.s32 %s2518_s22, %s3337_s24  ;;  %s505_s6 = sadd.s32 1, %s2490_s29 }
  0x41   : > { %p503_p10 = scmp.eq.s32.totalorder %s3277_s1, 0  ;;  %p515_p11 = scmp.ne.s32.totalorder %s2490_s29, %s2486_s28 }
  0x42   : > { %p2754_p12 = por %p259_p9, %p258_p8  ;;  %p516_p13 = scmp.eq.s32.totalorder %s2740_s3, 3 }
  0x43   : > { %s2760_s23 = scalar_select %p503_p10, %s2490_s29, %s505_s6  }
  0x44   : > { %p2762_p0 = por %p516_p13, %p515_p11  ;;  %p521_p1 = scmp.ne.s32.totalorder %s2486_s28, %s2482_s27 }
  0x45   : > { %3279 = sst [smem:[#allocation30_spill]] %s2760_s23  ;;  %p522_p2 = scmp.eq.s32.totalorder %s2017_s17, 3 }
  0x46   : > { %s3280_s4 = scalar_select %p2762_p0, 1, 0 }
  0x47   : > { %p2018_p3 = scmp.ge.s32.totalorder %s2522_s2, 1  ;;  %p529_p4 = scmp.lt.s32.totalorder %s2522_s2, 5 }
  0x48   : > { %3281 = sst [smem:[#allocation31_spill]] %s3280_s4  ;;  %p2770_p5 = por %p522_p2, %p521_p1 }
  0x49   : > { %s3284_s5 = sld [smem:[#allocation38_spill]]  ;;  %p2777_p6 = pnand %p2018_p3, %p529_p4 }
  0x4a   : > { %s3282_s30 = scalar_select %p2770_p5, 1, 0 }
  0x4b   : > { %p2075_p8 = pneg %p2777_p6  ;;  %s2528_s20 = smov [#allocation4]  }
  0x4c   : > { %3283 = sst [smem:[#allocation32_spill]] %s3282_s30  ;;  %s551_s17 = sshll.u32 %s2528_s20, 4  ;;  %s552_s17 = int_to_ptr.vmem [resolvable:$true] %s551_s17 }
  0x4d   : > { %p2076_p10 = pnand %p2075_p8, %p259_p9  ;;  %s2022_s1 = sshll.u32 %s2706_s15, 7 }
  0x4e   : > { %s2054_s6 = sshll.u32 %s2514_s21, 7  ;;  %s2529_s14 = smov 128  }
  0x4f   : > { %s549_s11 = sshll.u32 %s3284_s5, 4  ;;  %s3286_s5 = sld [smem:[#allocation43_spill]]  ;;  %s550_s11 = int_to_ptr.hbm [resolvable:$true] %s549_s11 }
  0x50   : > { %s2530_s16 = smov 8   ;;  %s623_s22 = scalar_lea.vmem [#allocation9], %s2022_s1 }
  0x51   : > { %2078 = dma.hbm_to_vmem [thread:$0]  (!%p2076_p10), %s550_s11, 2048, %s552_s17, [#allocation5], %s2529_s14, %s2529_s14, %s2530_s16  }
  0x52   : > { %s631_s23 = sshll.u32 %s623_s22, 4  ;;  %s632_s23 = int_to_ptr.vmem [resolvable:$true] %s631_s23 }
  0x53   : > { %2091 = dma.hbm_to_vmem [thread:$0]  (!%p2709_p7), %s2737_s9, 4096, %s2735_s25, %s2727_s26, %s2529_s14, %s2529_s14, %s2530_s16  }
  0x54   : > { %718 = sbr.rel (%p2777_p6) target bundleno = 2955 (0xb8b), region = 92 }
  0x55   : > { %s628_s8 = scalar_lea.hbm %s3286_s5, %s2054_s6 }
  0x56   : > { %s629_s24 = sshll.u32 %s628_s8, 4  ;;  %s630_s24 = int_to_ptr.hbm [resolvable:$true] %s629_s24 }
  0x57   : > { %2085 = dma.hbm_to_vmem [thread:$0]  (!%p2709_p7), %s630_s24, 2048, %s632_s23, %s2717_s19, %s2529_s14, %s2529_s14, %s2530_s16  }
  0x59   : > { %2465 = dma.done.wait (%p259_p9), [#allocation5], 2048  }
  0x5a   : > { %2467 = vsyncadd (%p259_p9), [#allocation5], 4294965248  ;;  %s725_s5 = sand.u32 1, %s2740_s3   ;;  %s2806_s8 = sand.u32 1, %s2498_s0  }
  0x5b   : > { %s2059_s15 = smul.u32 384, %s2806_s8  ;;  %s726_s19 = scalar_lea.sflag [#allocation8], %s725_s5 }
  0x5d   : > { %s2809_s13 = scalar_lea.vmem [#allocation7], %s2059_s15 }
  0x5e   : > { %2469 = dma.done.wait (%p2754_p12), %s726_s19, 8192  }
  0x5f   : > { %2471 = vsyncadd (%p2754_p12), %s726_s19, 4294959104  ;;  %s2033_s14 = sshll.u32 %s2806_s8, 7  ;;  %s2034_s16 = sshll.u32 %s2806_s8, 8 }
  0x60   : > { %s2817_s22 = scalar_lea.vmem [#allocation9], %s2033_s14  ;;  %s746_s24 = scalar_lea.sflag [#allocation11], %s725_s5 }
  0x61   : > { %s2819_s26 = scalar_lea.vmem [#allocation10], %s2034_s16 }
  0x62   : > { %2473 = dma.done.wait (%p2754_p12), %s746_s24, 8192  }
  0x63   : > { %2475 = vsyncadd (%p2754_p12), %s746_s24, 4294959104  ;;  %s3287_s25 = sld [smem:[#allocation23_spill]]  ;;  %s2874_s4 = scalar_lea.vmem [#allocation12], %s2034_s16 }
  0x64   : > { %s3288_s9 = sld [smem:[#allocation22_spill]]  ;;  %s3299_s11 = sand.u32 1, %s2486_s28  }
  0x65   : > { %s3289_s20 = sld [smem:[#allocation34_spill]] }
  0x66   : > { %s3290_s7 = sld [smem:[#allocation33_spill]] }
  0x67   : > { %s3296_s8 = sld [smem:[#allocation46_spill]] }
  0x68   : > { %s3297_s21 = sld [smem:[#allocation50_spill]] }
  0x69   : > { %p860_p7 = scmp.lt.s32.totalorder %s3287_s25, 1  ;;  %s3298_s30 = sld [smem:[#allocation48_spill]] }
  0x6a   : > { %p867_p9 = scmp.lt.s32.totalorder %s3288_s9, 1  ;;  %p2038_p11 = scmp.ne.s32.totalorder %s3288_s9, 0 }
  0x6b   : > { %s3339_s25 = smov (!%p860_p7, %s3287_s25), 1 }
  0x6c   : > { %s2830_s23 = scalar_select %p867_p9, %s3288_s9, 1 }
  0x6d   : > { %s2036_s12 = sshll.u32 %s3339_s25, 3  ;;  %s866_s17 = scalar_lea.vmem %s3289_s20, %s3339_s25 }
  0x6e   : > { %s863_s10 = scalar_lea.vmem %s3290_s7, %s2036_s12  ;;  %s2060_s0 = smul.u32 3, %s2830_s23 }
  0x6f   : > { %s3294_s25 = sld [smem:[#allocation45_spill]]  ;;  %s885_s15 = scalar_lea.vmem %s3296_s8, %s2830_s23 }
  0x70   : > { %s3295_s12 = sld [smem:[#allocation42_spill]]  ;;  %s2037_s14 = sshll.u32 %s2830_s23, 1 }
  0x71   : > { %s892_s19 = scalar_lea.vmem %s3297_s21, %s2830_s23  ;;  %s2872_s2 = scalar_lea.vmem %s3298_s30, %s2037_s14 }
  0x72   : > { %896 = sbr.rel (%p2038_p11) target bundleno = 128 (0x80), region = 116  ;;  %s3300_s20 = sld [smem:[#allocation35_spill]] (!%p2038_p11) }
  0x75   : > { %s882_s18 = scalar_lea.vmem %s3294_s25, %s2830_s23  ;;  %s2878_s25 = scalar_lea.vmem [#allocation13], %s3299_s11 }
  0x76   : > { %s2858_s6 = scalar_lea.vmem %s3295_s12, %s2060_s0 }
  0x77   : > { %v897_v0 = vld [vmem:[%s863_s10] sm:$0xff]  ;;  %v899_v1 = vlaneseq  ;;  %vm909_vm1 = vcmask 64512  }
  0x78   : > { %898 = vst [vmem:[#allocation2] sm:$0xff] %v897_v0  ;;  %v2199_v2 = vld [vmem:[%s866_s17] ss:$0 sm:$0xff] }
  0x79   : > { %v900_v3 = vshrl.u32 %v899_v1, 7  ;;  %v902_v4 = vld [vmem:[%s3300_s20] sm:$0xff] }
  0x7b   : > { %vm901_vm0 = vcmp.eq.s32.totalorder %v900_v3, 7 }
  0x7c   : > { %v907_v5 = vsel %vm901_vm0, %v2199_v2, 0.0 }
  0x7d   : > { %v908_v6 = vadd.f32 %v907_v5, %v902_v4 }
  0x7f   : > { %910 = vst.msk [vmem:[#allocation3] sm:$0xff] %vm909_vm1, %v908_v6 }
  0x80 PF: > { %v2884_v7 = vld [vmem:[#allocation2] sm:$0xff]  ;;  %v2531_v8 = vmov 128.0   ;;  %v995_v9 = vld [vmem:[%s2809_s13 + $0x168] sm:$0xff]  ;;  %v997_v11 = vld [vmem:[%s2809_s13 + $0x178] sm:$0xff]  ;;  %s3301_s9 = sld [smem:[#allocation39_spill]]  ;;  %vm1066_vm6 = vcmask 261120  }
  0x81   : > { %915 = vadd.xlane.f32.xlu0 %v2884_v7  ;;  %2206 = vrcp.f32 %v2531_v8  ;;  %v996_v10 = vld [vmem:[%s2809_s13 + $0x170] sm:$0xff]  ;;  %1006 = vmatpush.msra.mxu0 %v995_v9  ;;  %v993_v13 = vld [vmem:[%s2809_s13 + $0x158] sm:$0xff]  ;;  %v994_v14 = vld [vmem:[%s2809_s13 + $0x160] sm:$0xff]  ;;  %s3303_s12 = sld [smem:[#allocation40_spill]]  ;;  %s2532_s5 = smov 96   ;;  %vm1095_vm7 = vcmask 64512  }
  0x82   : > { %1026 = vmatpush.msra.mxu1 %v996_v10  ;;  %v992_v12 = vld [vmem:[%s2809_s13 + $0x150] sm:$0xff]  ;;  %1046 = vmatpush.msra.mxu2 %v997_v11  ;;  %v989_v25 = vld [vmem:[%s2809_s13 + $0x138] sm:$0xff]  ;;  %v990_v26 = vld [vmem:[%s2809_s13 + $0x140] sm:$0xff]  ;;  %s2534_s8 = smov 32   ;;  %vm1345_vm8 = vcmask 523264   ;;  %vm1347_vm9 = vcmask 785408  }
  0x83   : > { %1007 = vmatpush.msra.mxu0 %v992_v12  ;;  %v991_v27 = vld [vmem:[%s2809_s13 + $0x148] sm:$0xff]  ;;  %v986_v28 = vld [vmem:[%s2809_s13 + $0x120] sm:$0xff]  ;;  %v988_v30 = vld [vmem:[%s2809_s13 + $0x130] sm:$0xff]  ;;  %s3305_s24 = sld [smem:[#allocation44_spill]] }
  0x84   : > { %1027 = vmatpush.msra.mxu1 %v993_v13  ;;  %1047 = vmatpush.msra.mxu2 %v994_v14  ;;  %v987_v29 = vld [vmem:[%s2809_s13 + $0x128] sm:$0xff]  ;;  %v984_v32 = vld [vmem:[%s2809_s13 + $0x110] sm:$0xff]  ;;  %v985_v33 = vld [vmem:[%s2809_s13 + $0x118] sm:$0xff] }
  0x85   : > { %1008 = vmatpush.msra.mxu0 %v989_v25  ;;  %v983_v31 = vld [vmem:[%s2809_s13 + $0x108] sm:$0xff]  ;;  %v980_v34 = vld [vmem:[%s2809_s13 + $0xf0] sm:$0xff]  ;;  %v981_v35 = vld [vmem:[%s2809_s13 + $0xf8] sm:$0xff] }
  0x86   : > { %1028 = vmatpush.msra.mxu1 %v990_v26  ;;  %1048 = vmatpush.msra.mxu2 %v991_v27  ;;  %v982_v36 = vld [vmem:[%s2809_s13 + $0x100] sm:$0xff]  ;;  %v977_v37 = vld [vmem:[%s2809_s13 + $0xd8] sm:$0xff]  ;;  %v979_v39 = vld [vmem:[%s2809_s13 + $0xe8] sm:$0xff]  ;;  %s3302_s17 = scalar_lea.vmem %s3301_s9, %s2830_s23 }
  0x87   : > { %v2207_v15 = vpop.eup %2206  ;;  %1009 = vmatpush.msra.mxu0 %v986_v28  ;;  %v978_v38 = vld [vmem:[%s2809_s13 + $0xe0] sm:$0xff]  ;;  %v975_v41 = vld [vmem:[%s2809_s13 + $0xc8] sm:$0xff]  ;;  %v976_v42 = vld [vmem:[%s2809_s13 + $0xd0] sm:$0xff]  ;;  %s3304_s7 = scalar_lea.vmem %s3303_s12, %s2830_s23 }
  0x88   : > { %v918_v16 = vmul.f32 128.0, %v2207_v15  ;;  %vm922_vm2 = vweird.f32 %v2207_v15  ;;  %1029 = vmatpush.msra.mxu1 %v987_v29  ;;  %1049 = vmatpush.msra.mxu2 %v988_v30  ;;  %v974_v40 = vld [vmem:[%s2809_s13 + $0xc0] sm:$0xff]  ;;  %v971_v43 = vld [vmem:[%s2809_s13 + $0xa8] sm:$0xff]  ;;  %v972_v44 = vld [vmem:[%s2809_s13 + $0xb0] sm:$0xff] }
  0x89   : > { %1010 = vmatpush.msra.mxu0 %v983_v31  ;;  %v973_v45 = vld [vmem:[%s2809_s13 + $0xb8] sm:$0xff]  ;;  %v968_v46 = vld [vmem:[%s2809_s13 + $0x90] sm:$0xff]  ;;  %v970_v48 = vld [vmem:[%s2809_s13 + $0xa0] sm:$0xff]  ;;  %s3306_s29 = scalar_lea.vmem %s3305_s24, %s2830_s23 }
  0x8a   : > { %v919_v17 = vsub.f32 1.0, %v918_v16  ;;  %1030 = vmatpush.msra.mxu1 %v984_v32  ;;  %1050 = vmatpush.msra.mxu2 %v985_v33  ;;  %v969_v47 = vld [vmem:[%s2809_s13 + $0x98] sm:$0xff]  ;;  %v966_v50 = vld [vmem:[%s2809_s13 + $0x80] sm:$0xff]  ;;  %v967_v51 = vld [vmem:[%s2809_s13 + $0x88] sm:$0xff] }
  0x8b   : > { %1011 = vmatpush.msra.mxu0 %v980_v34  ;;  %v965_v49 = vld [vmem:[%s2809_s13 + $0x78] sm:$0xff]  ;;  %v962_v52 = vld [vmem:[%s2809_s13 + $0x60] sm:$0xff]  ;;  %v963_v53 = vld [vmem:[%s2809_s13 + $0x68] sm:$0xff] }
  0x8c   : > { %v920_v18 = vmul.f32 %v2207_v15, %v919_v17  ;;  %1031 = vmatpush.msra.mxu1 %v981_v35  ;;  %1051 = vmatpush.msra.mxu2 %v982_v36  ;;  %v964_v54 = vld [vmem:[%s2809_s13 + $0x70] sm:$0xff]  ;;  %v959_v55 = vld [vmem:[%s2809_s13 + $0x48] sm:$0xff]  ;;  %v961_v57 = vld [vmem:[%s2809_s13 + $0x58] sm:$0xff] }
  0x8d   : > { %1012 = vmatpush.msra.mxu0 %v977_v37  ;;  %v960_v56 = vld [vmem:[%s2809_s13 + $0x50] sm:$0xff]  ;;  %v957_v59 = vld [vmem:[%s2809_s13 + $0x38] sm:$0xff]  ;;  %v958_v60 = vld [vmem:[%s2809_s13 + $0x40] sm:$0xff] }
  0x8e   : > { %v921_v19 = vadd.f32 %v2207_v15, %v920_v18  ;;  %1032 = vmatpush.msra.mxu1 %v978_v38  ;;  %1052 = vmatpush.msra.mxu2 %v979_v39  ;;  %v956_v58 = vld [vmem:[%s2809_s13 + $0x30] sm:$0xff]  ;;  %v953_v61 = vld [vmem:[%s2809_s13 + $0x18] sm:$0xff]  ;;  %v954_v62 = vld [vmem:[%s2809_s13 + $0x20] sm:$0xff] }
  0x8f   : > { %1013 = vmatpush.msra.mxu0 %v974_v40  ;;  %v955_v63 = vld [vmem:[%s2809_s13 + $0x28] sm:$0xff]  ;;  %v950_v0 = vld [vmem:[%s2809_s13] sm:$0xff]  ;;  %v952_v2 = vld [vmem:[%s2809_s13 + $0x10] sm:$0xff] }
  0x90   : > { %v2893_v20 = vsel %vm922_vm2, %v2207_v15, %v921_v19  ;;  %1033 = vmatpush.msra.mxu1 %v975_v41  ;;  %1053 = vmatpush.msra.mxu2 %v976_v42  ;;  %v951_v1 = vld [vmem:[%s2809_s13 + $0x8] sm:$0xff]  ;;  %v2200_v13 = vld [vmem:[%s3302_s17] ss:$0 sm:$0xff]  ;;  %v912_v34 = vld [vmem:[#allocation3] sm:$0xff] }
  0x91   : > { %1014 = vmatpush.msra.mxu0 %v971_v43  ;;  %v2201_v16 = vld [vmem:[%s3304_s7] ss:$0 sm:$0xff] }
  0x92   : > { %1034 = vmatpush.msra.mxu1 %v972_v44  ;;  %1054 = vmatpush.msra.mxu2 %v973_v45  ;;  %v998_v19 = vld [vmem:[%s2858_s6] sm:$0x7]  ;;  %s2533_s6 = smov 64  }
  0x93   : > { %1015 = vmatpush.msra.mxu0 %v968_v46  ;;  %v1002_v27 = vperm.slane %v998_v19, 2 }
  0x94   : > { %1035 = vmatpush.msra.mxu1 %v969_v47  ;;  %1055 = vmatpush.msra.mxu2 %v970_v48 }
  0x95   : > { %1016 = vmatpush.msra.mxu0 %v965_v49 }
  0x96   : > { %1036 = vmatpush.msra.mxu1 %v966_v50  ;;  %1056 = vmatpush.msra.mxu2 %v967_v51 }
  0x97   : > { %1017 = vmatpush.msra.mxu0 %v962_v52 }
  0x98   : > { %1037 = vmatpush.msra.mxu1 %v963_v53  ;;  %1057 = vmatpush.msra.mxu2 %v964_v54 }
  0x99   : > { %1018 = vmatpush.msra.mxu0 %v959_v55 }
  0x9a   : > { %1038 = vmatpush.msra.mxu1 %v960_v56  ;;  %1058 = vmatpush.msra.mxu2 %v961_v57 }
  0x9b   : > { %1019 = vmatpush.msra.mxu0 %v956_v58 }
  0x9c   : > { %1039 = vmatpush.msra.mxu1 %v957_v59  ;;  %1059 = vmatpush.msra.mxu2 %v958_v60 }
  0x9d   : > { %1020 = vmatpush.msra.mxu0 %v953_v61 }
  0x9e   : > { %1040 = vmatpush.msra.mxu1 %v954_v62  ;;  %1060 = vmatpush.msra.mxu2 %v955_v63 }
  0x9f   : > { %1021 = vmatpush.msra.mxu0 %v950_v0 }
  0xa0   : > { %1041 = vmatpush.msra.mxu1 %v951_v1  ;;  %1061 = vmatpush.msra.mxu2 %v952_v2 }
  0xf4   : > { %v916_v21 = vpop.xlane.xlu0 %915 }
  0xf5   : > { %v924_v22 = vmul.f32 %v2893_v20, %v916_v21  ;;  %v1001_v21 = vperm.slane %v998_v19, 1 }
  0xf7   : > { %v2897_v23 = vsub.f32 %v2884_v7, %v924_v22  ;;  %v1000_v22 = vperm.slane %v998_v19, 0 }
  0xf9   : > { %v926_v24 = vmul.f32 %v2897_v23, %v2897_v23 }
  0xfb   : > { %927 = vadd.xlane.f32.xlu0 %v926_v24 }
 0x16e   : > { %v928_v3 = vpop.xlane.xlu0 %927 }
 0x16f   : > { %v929_v4 = vmul.f32 %v928_v3, %v2893_v20 }
 0x171   : > { %v930_v5 = vadd.f32 1e-05, %v929_v4 }
 0x173   : > { %2208 = vrsqrt.f32 %v930_v5  ;;  %vm937_vm4 = vweird.f32 %v930_v5 }
 0x179   : > { %v2209_v6 = vpop.eup %2208 }
 0x17a   : > { %v932_v8 = vmul.f32 %v2209_v6, %v930_v5  ;;  %vm938_vm3 = vweird.f32 %v2209_v6 }
 0x17b   : > { %vm939_vm5 = vmor %vm937_vm4, %vm938_vm3 }
 0x17c   : > { %v933_v9 = vmul.f32 %v2209_v6, %v932_v8 }
 0x17e   : > { %v934_v10 = vmul.f32 0.5, %v933_v9 }
 0x180   : > { %v935_v11 = vsub.f32 1.5, %v934_v10 }
 0x182   : > { %v936_v12 = vmul.f32 %v2209_v6, %v935_v11 }
 0x184   : > { %v940_v14 = vsel %vm939_vm5, %v2209_v6, %v936_v12 }
 0x185   : > { %v941_v15 = vmul.f32 %v940_v14, %v2897_v23 }
 0x187   : > { %v945_v17 = vmul.f32 %v2200_v13, %v941_v15 }
 0x189   : > { %v949_v18 = vadd.f32 %v2201_v16, %v945_v17 }
 0x18b   : > { %1022 = vmatmul.f32.vlgmr.msra.gmra.mxu0 %v949_v18  ;;  %1042 = vmatmul.f32.vlgmr.msra.gmra.mxu1 %v949_v18 }
 0x18c   : > { %1062 = vmatmul.f32.vlgmr.msra.gmra.mxu2 %v949_v18 }
 0x208   : > { %v1043_v24 = vpop.f32.mrf.mxu1  ;;  %v1023_v25 = vpop.f32.mrf.mxu0 }
 0x209   : > { %v1044_v26 = vadd.f32 %v1043_v24, %v1001_v21  ;;  %v1024_v23 = vadd.f32 %v1023_v25, %v1000_v22 }
 0x20b   : > { %1132 = vrot.lane.b32.xlu1 %v1044_v26, %s2532_s5  ;;  %2039 = vmatpush.xpose.msk.msrb.mxu0 %vm1066_vm6, %v1044_v26 }
 0x20e   : > { %2040 = vmatmul.msk.f32.vlgmr.msrb.gmra.mxu0 %vm1066_vm6, %v1024_v23 }
 0x20f   : > { %v1063_v28 = vpop.f32.mrf.mxu2 }
 0x210   : > { %v2959_v29 = vadd.f32 %v1063_v28, %v1002_v27 }
 0x212   : > { %1172 = vrot.lane.b32.xlu0 %v2959_v29, %s2532_s5  ;;  %1125 = vmatpush.msrb.mxu2 %v2959_v29 }
 0x213   : > { %1130 = vrot.lane.b32.xlu1 %v1024_v23, %s2532_s5 }
 0x21b   : > { %1200 = vrot.lane.b32.xlu1 %v1044_v26, %s2533_s6 }
 0x223   : > { %1198 = vrot.lane.b32.xlu1 %v1024_v23, %s2533_s6 }
 0x22b   : > { %1265 = vrot.lane.b32.xlu1 %v1024_v23, %s2534_s8 }
 0x27d   : > { %v1133_v30 = vpop.permute.xlu1 %1132 }
 0x27e   : > { %2042 = vmatpush.xpose.msk.msrb.mxu1 %vm1066_vm6, %v1133_v30  ;;  %v1364_v30 = vld [vmem:[%s2817_s22 + $0x78] sm:$0xff] }
 0x284   : > { %v1173_v31 = vpop.permute.xlu0 %1172 }
 0x285   : > { %1193 = vmatpush.msra.mxu3 %v1173_v31  ;;  %v1131_v32 = vpop.permute.xlu1 %1130  ;;  %v1363_v31 = vld [vmem:[%s2817_s22 + $0x70] sm:$0xff] }
 0x286   : > { %2043 = vmatmul.msk.f32.vlgmr.msrb.gmra.mxu1 %vm1066_vm6, %v1131_v32  ;;  %v1362_v32 = vld [vmem:[%s2817_s22 + $0x68] sm:$0xff] }
 0x28b   : > { %v1090_v33 = vpop.f32.mrf.mxu0 }
 0x28c   : > { %v1093_v35 = vmul.f32 0.17677669, %v1090_v33  ;;  %v1361_v33 = vld [vmem:[%s2817_s22 + $0x60] sm:$0xff] }
 0x28d   : > { %v1201_v36 = vpop.permute.xlu1 %1200 }
 0x28e   : > { %2045 = vmatpush.xpose.msk.msrb.mxu3 %vm1066_vm6, %v1201_v36  ;;  %v1094_v37 = vadd.f32 %v1093_v35, %v912_v34  ;;  %v1359_v35 = vld [vmem:[%s2817_s22 + $0x50] sm:$0xff]  ;;  %v1358_v36 = vld [vmem:[%s2817_s22 + $0x48] sm:$0xff] }
 0x290   : > { %v1096_v38 = vsel %vm1095_vm7, %v1094_v37, -inf }
 0x291   : > { %1097 = vmax.xlane.f32.xlu0 %v1096_v38  ;;  %v1356_v38 = vld [vmem:[%s2817_s22 + $0x38] sm:$0xff] }
 0x295   : > { %v1199_v58 = vpop.permute.xlu1 %1198 }
 0x29d   : > { %v1266_v62 = vpop.permute.xlu1 %1265 }
 0x303   : > { %v1155_v39 = vpop.f32.mrf.mxu1 }
 0x304   : > { %v1158_v40 = vmul.f32 0.17677669, %v1155_v39  ;;  %v1098_v41 = vpop.xlane.xlu0 %1097  ;;  %v1355_v39 = vld [vmem:[%s2817_s22 + $0x30] sm:$0xff] }
 0x305   : > { %v1099_v42 = vsub.f32 %v1094_v37, %v1098_v41  ;;  %v1357_v37 = vld [vmem:[%s2817_s22 + $0x40] sm:$0xff] }
 0x306   : > { %v1159_v43 = vadd.f32 %v1158_v40, %v912_v34  ;;  %v1354_v40 = vld [vmem:[%s2817_s22 + $0x28] sm:$0xff]  ;;  %v1353_v41 = vld [vmem:[%s2817_s22 + $0x20] sm:$0xff] }
 0x307   : > { %v1100_v44 = vmul.f32 1.442695, %v1099_v42  ;;  %v1352_v42 = vld [vmem:[%s2817_s22 + $0x18] sm:$0xff] }
 0x308   : > { %v1160_v45 = vsel %vm1095_vm7, %v1159_v43, -inf }
 0x309   : > { %2210 = vpow2.f32 %v1100_v44  ;;  %1161 = vmax.xlane.f32.xlu2 %v1160_v45  ;;  %v1350_v44 = vld [vmem:[%s2817_s22 + $0x8] sm:$0xff]  ;;  %v1349_v45 = vld [vmem:[%s2817_s22] sm:$0xff] }
 0x30f   : > { %v2211_v46 = vpop.eup %2210 }
 0x310   : > { %v1102_v47 = vsel %vm1095_vm7, %v2211_v46, 0.0 }
 0x311   : > { %1103 = vadd.xlane.f32.xlu0 %v1102_v47 }
 0x325   : > { %1306 = vrot.lane.b32.xlu0 %v2959_v29, %s2534_s8 }
 0x37c   : > { %v1162_v48 = vpop.xlane.xlu2 %1161 }
 0x37d   : > { %v1163_v49 = vsub.f32 %v1159_v43, %v1162_v48  ;;  %v1351_v43 = vld [vmem:[%s2817_s22 + $0x10] sm:$0xff] }
 0x37f   : > { %v1164_v50 = vmul.f32 1.442695, %v1163_v49 }
 0x381   : > { %2212 = vpow2.f32 %v1164_v50 }
 0x384   : > { %v1104_v51 = vpop.xlane.xlu0 %1103 }
 0x385   : > { %2214 = vrcp.f32 %v1104_v51 }
 0x387   : > { %v2213_v52 = vpop.eup %2212 }
 0x388   : > { %v1166_v53 = vsel %vm1095_vm7, %v2213_v52, 0.0 }
 0x389   : > { %1167 = vadd.xlane.f32.xlu2 %v1166_v53 }
 0x38b   : > { %v2215_v54 = vpop.eup %2214 }
 0x38c   : > { %v1106_v55 = vmul.f32 %v2215_v54, %v2211_v46 }
 0x38e   : > { %2041 = vmatmul.msk.f32.vlgmr.msrb.gmra.mxu2 %vm1095_vm7, %v1106_v55 }
 0x397   : > { %v1307_v56 = vpop.permute.xlu0 %1306 }
 0x398   : > { %1327 = vmatpush.msra.mxu2 %v1307_v56  ;;  %v1451_v56 = vld [vmem:[%s2819_s26 + $0xf0] sm:$0xff] }
 0x3a1   : > { %1267 = vrot.lane.b32.xlu2 %v1044_v26, %s2534_s8 }
 0x3fc   : > { %v1168_v57 = vpop.xlane.xlu2 %1167 }
 0x3fd   : > { %2216 = vrcp.f32 %v1168_v57  ;;  %v1452_v57 = vld [vmem:[%s2819_s26 + $0xf8] sm:$0xff] }
 0x403   : > { %v2217_v59 = vpop.eup %2216 }
 0x404   : > { %v1268_v60 = vpop.permute.xlu2 %1267  ;;  %v1170_v61 = vmul.f32 %v2217_v59, %v2213_v52  ;;  %v2202_v52 = vld [vmem:[%s3306_s29] ss:$0 sm:$0xff]  ;;  %v1450_v59 = vld [vmem:[%s2819_s26 + $0xe8] sm:$0xff] }
 0x405   : > { %2048 = vmatpush.xpose.msk.msra.mxu1 %vm1066_vm6, %v1268_v60 }
 0x406   : > { %2044 = vmatmul.msk.f32.vlgmr.msra.gmra.mxu3 %vm1095_vm7, %v1170_v61 }
 0x407   : > { %1365 = vmatpush.msra.mxu3 %v1364_v30 }
 0x408   : > { %2049 = vmatmul.msk.f32.vlgmr.msra.gmra.mxu1 %vm1066_vm6, %v1266_v62 }
 0x409   : > { %1366 = vmatpush.msra.mxu3 %v1363_v31  ;;  %1479 = vmatpush.msrb.mxu1 %v1452_v57 }
 0x40b   : > { %1367 = vmatpush.msra.mxu3 %v1362_v32  ;;  %1480 = vmatpush.msrb.mxu1 %v1450_v59  ;;  %v1607_v59 = vld [vmem:[%s2874_s4 + $0xe0] sm:$0xff] }
 0x40d   : > { %1368 = vmatpush.msra.mxu3 %v1361_v33 }
 0x40e   : > { %2046 = vmatmul.msk.f32.vlgmr.msrb.gmra.mxu3 %vm1066_vm6, %v1199_v58  ;;  %v1449_v58 = vld [vmem:[%s2819_s26 + $0xe0] sm:$0xff] }
 0x411   : > { %v1127_v27 = vpop.f32.mrf.mxu2 }
 0x485   : > { %v1290_v63 = vpop.f32.mrf.mxu1 }
 0x486   : > { %v1293_v0 = vmul.f32 0.17677669, %v1290_v63  ;;  %v1447_v63 = vld [vmem:[%s2819_s26 + $0xd0] sm:$0xff] }
 0x488   : > { %v1294_v1 = vadd.f32 %v1293_v0, %v912_v34  ;;  %v1448_v0 = vld [vmem:[%s2819_s26 + $0xd8] sm:$0xff] }
 0x489   : > { %v1195_v2 = vpop.f32.mrf.mxu3  ;;  %1481 = vmatpush.msrb.mxu1 %v1448_v0 }
 0x48a   : > { %v1295_v3 = vsel %vm1095_vm7, %v1294_v1, -inf }
 0x48b   : > { %1296 = vmax.xlane.f32.xlu1 %v1295_v3  ;;  %v1443_v3 = vld [vmem:[%s2819_s26 + $0xb0] sm:$0xff] }
 0x491   : > { %v1223_v4 = vpop.f32.mrf.mxu3 }
 0x492   : > { %v1226_v5 = vmul.f32 0.17677669, %v1223_v4  ;;  %v1444_v4 = vld [vmem:[%s2819_s26 + $0xb8] sm:$0xff] }
 0x494   : > { %v1227_v6 = vadd.f32 %v1226_v5, %v912_v34  ;;  %v1360_v34 = vld [vmem:[%s2817_s22 + $0x58] sm:$0xff]  ;;  %v1441_v5 = vld [vmem:[%s2819_s26 + $0xa0] sm:$0xff] }
 0x495   : > { %1369 = vmatpush.msra.mxu3 %v1360_v34 }
 0x496   : > { %v1228_v8 = vsel %vm1095_vm7, %v1227_v6, -inf }
 0x497   : > { %1229 = vmax.xlane.f32.xlu2 %v1228_v8  ;;  %1370 = vmatpush.msra.mxu3 %v1359_v35  ;;  %v1439_v8 = vld [vmem:[%s2819_s26 + $0x90] sm:$0xff] }
 0x499   : > { %1371 = vmatpush.msra.mxu3 %v1358_v36 }
 0x49b   : > { %1372 = vmatpush.msra.mxu3 %v1357_v37 }
 0x49d   : > { %1373 = vmatpush.msra.mxu3 %v1356_v38  ;;  %v2203_v38 = vld [vmem:[%s882_s18] ss:$0 sm:$0xff] }
 0x49f   : > { %1374 = vmatpush.msra.mxu3 %v1355_v39 }
 0x4a1   : > { %1375 = vmatpush.msra.mxu3 %v1354_v40 }
 0x4a3   : > { %1376 = vmatpush.msra.mxu3 %v1353_v41  ;;  %v2204_v41 = vld [vmem:[%s885_s15] ss:$0 sm:$0xff] }
 0x4a5   : > { %1377 = vmatpush.msra.mxu3 %v1352_v42 }
 0x4a7   : > { %1378 = vmatpush.msra.mxu3 %v1351_v43 }
 0x4a9   : > { %1379 = vmatpush.msra.mxu3 %v1350_v44  ;;  %v1453_v44 = vld [vmem:[%s2872_s2] sm:$0x3] }
 0x4ab   : > { %1380 = vmatpush.msra.mxu3 %v1349_v45  ;;  %v1594_v45 = vld [vmem:[%s2874_s4 + $0x78] sm:$0xff] }
 0x4ac   : > { %1611 = vmatpush.msrb.mxu2 %v1594_v45 }
 0x4fe   : > { %v1297_v9 = vpop.xlane.xlu1 %1296 }
 0x4ff   : > { %v1298_v10 = vsub.f32 %v1294_v1, %v1297_v9  ;;  %v1445_v1 = vld [vmem:[%s2819_s26 + $0xc0] sm:$0xff]  ;;  %v1440_v9 = vld [vmem:[%s2819_s26 + $0x98] sm:$0xff] }
 0x501   : > { %v1299_v11 = vmul.f32 1.442695, %v1298_v10  ;;  %v1437_v10 = vld [vmem:[%s2819_s26 + $0x80] sm:$0xff] }
 0x503   : > { %2218 = vpow2.f32 %v1299_v11  ;;  %v1438_v11 = vld [vmem:[%s2819_s26 + $0x88] sm:$0xff] }
 0x509   : > { %v2219_v12 = vpop.eup %2218 }
 0x50a   : > { %v1230_v13 = vpop.xlane.xlu2 %1229  ;;  %v1301_v14 = vsel %vm1095_vm7, %v2219_v12, 0.0 }
 0x50b   : > { %v1231_v15 = vsub.f32 %v1227_v6, %v1230_v13  ;;  %1302 = vadd.xlane.f32.xlu2 %v1301_v14  ;;  %v1442_v6 = vld [vmem:[%s2819_s26 + $0xa8] sm:$0xff]  ;;  %v1436_v13 = vld [vmem:[%s2819_s26 + $0x78] sm:$0xff]  ;;  %v1433_v14 = vld [vmem:[%s2819_s26 + $0x60] sm:$0xff] }
 0x50d   : > { %v1232_v16 = vmul.f32 1.442695, %v1231_v15  ;;  %v1434_v15 = vld [vmem:[%s2819_s26 + $0x68] sm:$0xff] }
 0x50f   : > { %2220 = vpow2.f32 %v1232_v16  ;;  %v1431_v16 = vld [vmem:[%s2819_s26 + $0x50] sm:$0xff] }
 0x515   : > { %v2221_v17 = vpop.eup %2220 }
 0x516   : > { %v1234_v18 = vsel %vm1095_vm7, %v2221_v17, 0.0 }
 0x517   : > { %1235 = vadd.xlane.f32.xlu1 %v1234_v18  ;;  %v1429_v18 = vld [vmem:[%s2819_s26 + $0x40] sm:$0xff] }
 0x523   : > { %1239 = vrot.lane.b32.xlu2 %v2959_v29, %s2533_s6 }
 0x530   : > { %1333 = vrot.lane.b32.xlu1 %v1195_v2, %s2534_s8  ;;  %v1446_v2 = vld [vmem:[%s2819_s26 + $0xc8] sm:$0xff] }
 0x531   : > { %1482 = vmatpush.msrb.mxu1 %v1446_v2  ;;  %v1605_v2 = vld [vmem:[%s2874_s4 + $0xd0] sm:$0xff] }
 0x533   : > { %1483 = vmatpush.msrb.mxu1 %v1444_v4 }
 0x535   : > { %1484 = vmatpush.msrb.mxu1 %v1442_v6  ;;  %v1604_v6 = vld [vmem:[%s2874_s4 + $0xc8] sm:$0xff] }
 0x537   : > { %1485 = vmatpush.msrb.mxu1 %v1440_v9 }
 0x539   : > { %1486 = vmatpush.msrb.mxu1 %v1438_v11  ;;  %v1603_v11 = vld [vmem:[%s2874_s4 + $0xc0] sm:$0xff] }
 0x53b   : > { %1487 = vmatpush.msrb.mxu1 %v1436_v13  ;;  %v1602_v13 = vld [vmem:[%s2874_s4 + $0xb8] sm:$0xff] }
 0x53d   : > { %1488 = vmatpush.msrb.mxu1 %v1434_v15  ;;  %v1601_v15 = vld [vmem:[%s2874_s4 + $0xb0] sm:$0xff] }
 0x57e   : > { %v1303_v19 = vpop.xlane.xlu2 %1302 }
 0x57f   : > { %2222 = vrcp.f32 %v1303_v19  ;;  %v1430_v19 = vld [vmem:[%s2819_s26 + $0x48] sm:$0xff] }
 0x585   : > { %v2223_v21 = vpop.eup %2222 }
 0x586   : > { %v1305_v22 = vmul.f32 %v2223_v21, %v2219_v12  ;;  %v1240_v24 = vpop.permute.xlu2 %1239  ;;  %v1435_v12 = vld [vmem:[%s2819_s26 + $0x70] sm:$0xff] }
 0x587   : > { %1260 = vmatpush.msra.mxu0 %v1240_v24  ;;  %v1427_v21 = vld [vmem:[%s2819_s26 + $0x30] sm:$0xff]  ;;  %v1425_v24 = vld [vmem:[%s2819_s26 + $0x20] sm:$0xff] }
 0x588   : > { %2050 = vmatmul.msk.f32.vlgmr.msra.gmra.mxu2 %vm1095_vm7, %v1305_v22  ;;  %v1428_v22 = vld [vmem:[%s2819_s26 + $0x38] sm:$0xff] }
 0x589   : > { %1459 = vmatpush.msrb.mxu0 %v1451_v56 }
 0x58a   : > { %v1236_v25 = vpop.xlane.xlu1 %1235 }
 0x58b   : > { %2224 = vrcp.f32 %v1236_v25  ;;  %1460 = vmatpush.msrb.mxu0 %v1449_v58  ;;  %v1426_v25 = vld [vmem:[%s2819_s26 + $0x28] sm:$0xff]  ;;  %v1591_v58 = vld [vmem:[%s2874_s4 + $0x60] sm:$0xff] }
 0x58d   : > { %1461 = vmatpush.msrb.mxu0 %v1447_v63 }
 0x58f   : > { %1462 = vmatpush.msrb.mxu0 %v1445_v1  ;;  %v1589_v1 = vld [vmem:[%s2874_s4 + $0x50] sm:$0xff] }
 0x591   : > { %v2225_v26 = vpop.eup %2224  ;;  %1463 = vmatpush.msrb.mxu0 %v1443_v3 }
 0x592   : > { %v1238_v23 = vmul.f32 %v2225_v26, %v2221_v17  ;;  %v1432_v17 = vld [vmem:[%s2819_s26 + $0x58] sm:$0xff]  ;;  %v1423_v26 = vld [vmem:[%s2819_s26 + $0x10] sm:$0xff] }
 0x593   : > { %1464 = vmatpush.msrb.mxu0 %v1441_v5  ;;  %1489 = vmatpush.msrb.mxu1 %v1432_v17  ;;  %v1588_v5 = vld [vmem:[%s2874_s4 + $0x48] sm:$0xff] }
 0x594   : > { %2047 = vmatmul.msk.f32.vlgmr.msra.gmra.mxu0 %vm1095_vm7, %v1238_v23  ;;  %v1424_v23 = vld [vmem:[%s2819_s26 + $0x18] sm:$0xff]  ;;  %v1600_v17 = vld [vmem:[%s2874_s4 + $0xa8] sm:$0xff] }
 0x595   : > { %1465 = vmatpush.msrb.mxu0 %v1439_v8  ;;  %1490 = vmatpush.msrb.mxu1 %v1430_v19  ;;  %v1583_v19 = vld [vmem:[%s2874_s4 + $0x20] sm:$0xff] }
 0x597   : > { %1466 = vmatpush.msrb.mxu0 %v1437_v10  ;;  %1491 = vmatpush.msrb.mxu1 %v1428_v22  ;;  %v1587_v10 = vld [vmem:[%s2874_s4 + $0x40] sm:$0xff] }
 0x599   : > { %1467 = vmatpush.msrb.mxu0 %v1435_v12  ;;  %1492 = vmatpush.msrb.mxu1 %v1426_v25  ;;  %v1586_v12 = vld [vmem:[%s2874_s4 + $0x38] sm:$0xff] }
 0x59b   : > { %1468 = vmatpush.msrb.mxu0 %v1433_v14  ;;  %1493 = vmatpush.msrb.mxu1 %v1424_v23  ;;  %v1585_v14 = vld [vmem:[%s2874_s4 + $0x30] sm:$0xff]  ;;  %v1598_v23 = vld [vmem:[%s2874_s4 + $0x98] sm:$0xff] }
 0x59d   : > { %1469 = vmatpush.msrb.mxu0 %v1431_v16  ;;  %v1584_v16 = vld [vmem:[%s2874_s4 + $0x28] sm:$0xff] }
 0x59f   : > { %1470 = vmatpush.msrb.mxu0 %v1429_v18 }
 0x5a1   : > { %1471 = vmatpush.msrb.mxu0 %v1427_v21  ;;  %v1599_v21 = vld [vmem:[%s2874_s4 + $0xa0] sm:$0xff] }
 0x5a2   : > { %v1334_v46 = vpop.permute.xlu1 %1333 }
 0x5a3   : > { %v1344_v47 = vsel %vm1066_vm6, %v1127_v27, %v1334_v46  ;;  %1472 = vmatpush.msrb.mxu0 %v1425_v24  ;;  %v1421_v27 = vld [vmem:[%s2819_s26] sm:$0xff]  ;;  %v1610_v46 = vld [vmem:[%s2874_s4 + $0xf8] sm:$0xff] }
 0x5a4   : > { %1631 = vmatpush.msrb.mxu3 %v1610_v46 }
 0x5a5   : > { %1473 = vmatpush.msrb.mxu0 %v1423_v26  ;;  %v1582_v26 = vld [vmem:[%s2874_s4 + $0x18] sm:$0xff] }
 0x5a7   : > { %1474 = vmatpush.msrb.mxu0 %v1421_v27 }
 0x60b   : > { %v1329_v28 = vpop.f32.mrf.mxu2 }
 0x60c   : > { %1341 = vrot.lane.b32.xlu2 %v1329_v28, %s2532_s5  ;;  %v1422_v28 = vld [vmem:[%s2819_s26 + $0x8] sm:$0xff] }
 0x60d   : > { %1494 = vmatpush.msrb.mxu1 %v1422_v28 }
 0x611   : > { %v1262_v29 = vpop.f32.mrf.mxu0 }
 0x612   : > { %1337 = vrot.lane.b32.xlu0 %v1262_v29, %s2533_s6 }
 0x666   : > { %v1342_v49 = vpop.permute.xlu2 %1341 }
 0x684   : > { %v1338_v48 = vpop.permute.xlu0 %1337 }
 0x685   : > { %v1346_v50 = vsel %vm1345_vm8, %v1344_v47, %v1338_v48  ;;  %v1455_v47 = vperm.slane %v1453_v44, 0  ;;  %v1456_v48 = vperm.slane %v1453_v44, 1 }
 0x686   : > { %v1348_v51 = vsel %vm1347_vm9, %v1346_v50, %v1342_v49  ;;  %v1593_v49 = vld [vmem:[%s2874_s4 + $0x70] sm:$0xff] }
 0x687   : > { %1381 = vmatmul.f32.vlgmr.msra.gmra.mxu3 %v1348_v51  ;;  %v1609_v50 = vld [vmem:[%s2874_s4 + $0xf0] sm:$0xff]  ;;  %1612 = vmatpush.msrb.mxu2 %v1593_v49  ;;  %v1592_v51 = vld [vmem:[%s2874_s4 + $0x68] sm:$0xff] }
 0x688   : > { %1632 = vmatpush.msrb.mxu3 %v1609_v50 }
 0x689   : > { %1613 = vmatpush.msrb.mxu2 %v1592_v51 }
 0x68b   : > { %1614 = vmatpush.msrb.mxu2 %v1591_v58 }
 0x70a   : > { %v1382_v53 = vpop.f32.mrf.mxu3 }
 0x70b   : > { %v1385_v54 = vadd.f32 %v1382_v53, %v2884_v7 }
 0x70d   : > { %v3017_v55 = vadd.f32 %v2202_v52, %v1385_v54  ;;  %v1608_v52 = vld [vmem:[%s2874_s4 + $0xe8] sm:$0xff] }
 0x70e   : > { %1633 = vmatpush.msrb.mxu3 %v1608_v52 }
 0x70f   : > { %1393 = vadd.xlane.f32.xlu0 %v3017_v55 }
 0x710   : > { %1634 = vmatpush.msrb.mxu3 %v1607_v59 }
 0x782   : > { %v1394_v60 = vpop.xlane.xlu0 %1393 }
 0x783   : > { %v1395_v7 = vmul.f32 %v1394_v60, %v2893_v20 }
 0x785   : > { %v3026_v61 = vsub.f32 %v3017_v55, %v1395_v7 }
 0x787   : > { %v1397_v62 = vmul.f32 %v3026_v61, %v3026_v61 }
 0x789   : > { %1398 = vadd.xlane.f32.xlu1 %v1397_v62  ;;  %v1606_v62 = vld [vmem:[%s2874_s4 + $0xd8] sm:$0xff] }
 0x78a   : > { %1635 = vmatpush.msrb.mxu3 %v1606_v62 }
 0x78c   : > { %1636 = vmatpush.msrb.mxu3 %v1605_v2 }
 0x78e   : > { %1637 = vmatpush.msrb.mxu3 %v1604_v6 }
 0x790   : > { %1638 = vmatpush.msrb.mxu3 %v1603_v11 }
 0x792   : > { %1639 = vmatpush.msrb.mxu3 %v1602_v13 }
 0x794   : > { %1640 = vmatpush.msrb.mxu3 %v1601_v15 }
 0x796   : > { %1641 = vmatpush.msrb.mxu3 %v1600_v17 }
 0x798   : > { %1642 = vmatpush.msrb.mxu3 %v1599_v21 }
 0x79a   : > { %1643 = vmatpush.msrb.mxu3 %v1598_v23 }
 0x7fc   : > { %v1399_v29 = vpop.xlane.xlu1 %1398 }
 0x7fd   : > { %v1400_v30 = vmul.f32 %v1399_v29, %v2893_v20 }
 0x7ff   : > { %v1401_v31 = vadd.f32 1e-05, %v1400_v30  ;;  %v1581_v30 = vld [vmem:[%s2874_s4 + $0x10] sm:$0xff] }
 0x801   : > { %2226 = vrsqrt.f32 %v1401_v31  ;;  %vm1408_vm11 = vweird.f32 %v1401_v31 }
 0x807   : > { %v2227_v32 = vpop.eup %2226 }
 0x808   : > { %v1403_v33 = vmul.f32 %v2227_v32, %v1401_v31  ;;  %vm1409_vm10 = vweird.f32 %v2227_v32  ;;  %v1597_v31 = vld [vmem:[%s2874_s4 + $0x90] sm:$0xff] }
 0x809   : > { %vm1410_vm12 = vmor %vm1408_vm11, %vm1409_vm10  ;;  %1644 = vmatpush.msrb.mxu3 %v1597_v31 }
 0x80a   : > { %v1404_v34 = vmul.f32 %v2227_v32, %v1403_v33 }
 0x80c   : > { %v1405_v35 = vmul.f32 0.5, %v1404_v34 }
 0x80e   : > { %v1406_v36 = vsub.f32 1.5, %v1405_v35 }
 0x810   : > { %v1407_v37 = vmul.f32 %v2227_v32, %v1406_v36 }
 0x812   : > { %v1411_v39 = vsel %vm1410_vm12, %v2227_v32, %v1407_v37  ;;  %v1580_v37 = vld [vmem:[%s2874_s4 + $0x8] sm:$0xff] }
 0x813   : > { %v1412_v40 = vmul.f32 %v1411_v39, %v3026_v61  ;;  %v1590_v61 = vld [vmem:[%s2874_s4 + $0x58] sm:$0xff] }
 0x814   : > { %1615 = vmatpush.msrb.mxu2 %v1590_v61 }
 0x815   : > { %v1416_v42 = vmul.f32 %v2203_v38, %v1412_v40  ;;  %v1596_v38 = vld [vmem:[%s2874_s4 + $0x88] sm:$0xff]  ;;  %v1579_v40 = vld [vmem:[%s2874_s4] sm:$0xff] }
 0x816   : > { %1616 = vmatpush.msrb.mxu2 %v1589_v1  ;;  %1645 = vmatpush.msrb.mxu3 %v1596_v38 }
 0x817   : > { %v1420_v43 = vadd.f32 %v2204_v41, %v1416_v42  ;;  %v1595_v41 = vld [vmem:[%s2874_s4 + $0x80] sm:$0xff]  ;;  %s3310_s4 = sld [smem:[#allocation22_spill]] }
 0x818   : > { %1617 = vmatpush.msrb.mxu2 %v1588_v5  ;;  %1646 = vmatpush.msrb.mxu3 %v1595_v41 }
 0x819   : > { %1475 = vmatmul.f32.vlgmr.msrb.gmra.mxu0 %v1420_v43  ;;  %1495 = vmatmul.f32.vlgmr.msrb.gmra.mxu1 %v1420_v43 }
 0x81a   : > { %1618 = vmatpush.msrb.mxu2 %v1587_v10 }
 0x81c   : > { %1619 = vmatpush.msrb.mxu2 %v1586_v12 }
 0x81d   : > { %p2051_p12 = scmp.ne.s32.totalorder %s3310_s4, 1 }
 0x81e   : > { %1620 = vmatpush.msrb.mxu2 %v1585_v14  ;;  %s3311_s21 = sld [smem:[#allocation36_spill]] (!%p2051_p12) }
 0x81f   : > { %s3312_s16 = sld [smem:[#allocation37_spill]] (!%p2051_p12) }
 0x820   : > { %1621 = vmatpush.msrb.mxu2 %v1584_v16 }
 0x822   : > { %1622 = vmatpush.msrb.mxu2 %v1583_v19 }
 0x824   : > { %1623 = vmatpush.msrb.mxu2 %v1582_v26 }
 0x826   : > { %1624 = vmatpush.msrb.mxu2 %v1581_v30 }
 0x828   : > { %1625 = vmatpush.msrb.mxu2 %v1580_v37 }
 0x82a   : > { %1626 = vmatpush.msrb.mxu2 %v1579_v40 }
 0x896   : > { %v1476_v53 = vpop.f32.mrf.mxu0  ;;  %v1496_v54 = vpop.f32.mrf.mxu1 }
 0x897   : > { %v3077_v56 = vadd.f32 %v1476_v53, %v1455_v47  ;;  %v3079_v57 = vadd.f32 %v1496_v54, %v1456_v48 }
 0x899   : > { %v3084_v60 = vmul.f32 0.70710677, %v3077_v56  ;;  %v3087_v7 = vmul.f32 0.70710677, %v3079_v57 }
 0x89b   : > { %v3092_v63 = vand.u32 2147483647, %v3084_v60  ;;  %v3095_v0 = vand.u32 2147483647, %v3087_v7  ;;  %vm1569_vm5 = vcmp.ge.f32.partialorder %v3084_v60, 0.0  ;;  %vm1570_vm6 = vcmp.ge.f32.partialorder %v3087_v7, 0.0 }
 0x89c   : > { %v2205_v60 = vld [vmem:[%s892_s19] ss:$0 sm:$0xff] }
 0x89d   : > { %v1505_v3 = vmul.f32 0.3275911, %v3092_v63  ;;  %v1506_v4 = vmul.f32 0.3275911, %v3095_v0  ;;  %v1557_v47 = vsub.f32 0.0, %v3092_v63  ;;  %v1558_v51 = vsub.f32 0.0, %v3095_v0 }
 0x89f   : > { %v1507_v8 = vadd.f32 1.0, %v1505_v3  ;;  %v3103_v9 = vadd.f32 1.0, %v1506_v4  ;;  %v1559_v54 = vmul.f32 %v1557_v47, %v3092_v63  ;;  %v1560_v61 = vmul.f32 %v1558_v51, %v3095_v0 }
 0x8a1   : > { %2228 = vrcp.f32 %v1507_v8  ;;  %v1520_v28 = vand.u32 2147483648, %v1507_v8  ;;  %v1518_v33 = vand.u32 2147483647, %v1507_v8  ;;  %v1535_v34 = vand.u32 2147483648, %v3103_v9 }
 0x8a2   : > { %2230 = vrcp.f32 %v3103_v9  ;;  %v1533_v36 = vand.u32 2147483647, %v3103_v9  ;;  %vm1514_vm15 = vweird.f32 %v1507_v8  ;;  %vm1529_vm1 = vweird.f32 %v3103_v9 }
 0x8a3   : > { %v1521_v42 = vor.u32 1.1754944e-38, %v1520_v28  ;;  %vm1519_vm2 = vcmp.eq.f32.partialorder %v1518_v33, 8.507059e+37  ;;  %v1536_v45 = vor.u32 1.1754944e-38, %v1535_v34  ;;  %v1561_v2 = vmul.f32 1.442695, %v1559_v54 }
 0x8a4   : > { %vm1534_vm4 = vcmp.eq.f32.partialorder %v1533_v36, 8.507059e+37  ;;  %v1563_v5 = vmul.f32 1.442695, %v1560_v61 }
 0x8a5   : > { %2232 = vpow2.f32 %v1561_v2 }
 0x8a6   : > { %2234 = vpow2.f32 %v1563_v5 }
 0x8a7   : > { %v2229_v18 = vpop.eup %2228 }
 0x8a8   : > { %v2231_v22 = vpop.eup %2230  ;;  %v1510_v24 = vmul.f32 %v2229_v18, %v1507_v8  ;;  %vm1515_vm13 = vweird.f32 %v2229_v18 }
 0x8a9   : > { %v1525_v25 = vmul.f32 %v2231_v22, %v3103_v9  ;;  %vm1530_vm14 = vweird.f32 %v2231_v22  ;;  %vm1516_vm0 = vmor %vm1514_vm15, %vm1515_vm13 }
 0x8aa   : > { %v1511_v27 = vsub.f32 1.0, %v1510_v24  ;;  %vm1531_vm3 = vmor %vm1529_vm1, %vm1530_vm14 }
 0x8ab   : > { %v1526_v29 = vsub.f32 1.0, %v1525_v25  ;;  %v2233_v14 = vpop.eup %2232  ;;  %v1499_v25 = vmul.f32 0.5, %v3077_v56 }
 0x8ac   : > { %v1512_v32 = vmul.f32 %v2229_v18, %v1511_v27  ;;  %v2235_v16 = vpop.eup %2234  ;;  %v1500_v27 = vmul.f32 0.5, %v3079_v57 }
 0x8ad   : > { %v1527_v35 = vmul.f32 %v2231_v22, %v1526_v29 }
 0x8ae   : > { %v1513_v39 = vadd.f32 %v2229_v18, %v1512_v32 }
 0x8af   : > { %v1528_v43 = vadd.f32 %v2231_v22, %v1527_v35 }
 0x8b0   : > { %v1517_v44 = vsel %vm1516_vm0, %v2229_v18, %v1513_v39 }
 0x8b1   : > { %v1522_v46 = vsel %vm1519_vm2, %v1521_v42, %v1517_v44  ;;  %v1532_v48 = vsel %vm1531_vm3, %v2231_v22, %v1528_v43 }
 0x8b2   : > { %v1539_v49 = vmul.f32 1.0614054, %v1522_v46  ;;  %v1537_v50 = vsel %vm1534_vm4, %v1536_v45, %v1532_v48 }
 0x8b3   : > { %v1540_v52 = vmul.f32 1.0614054, %v1537_v50 }
 0x8b4   : > { %v1541_v53 = vadd.f32 -1.4531521, %v1539_v49 }
 0x8b5   : > { %v1542_v58 = vadd.f32 -1.4531521, %v1540_v52 }
 0x8b6   : > { %v1543_v59 = vmul.f32 %v1541_v53, %v1522_v46 }
 0x8b7   : > { %v1544_v62 = vmul.f32 %v1542_v58, %v1537_v50 }
 0x8b8   : > { %v1545_v1 = vadd.f32 1.4214138, %v1543_v59 }
 0x8b9   : > { %v1546_v3 = vadd.f32 1.4214138, %v1544_v62 }
 0x8ba   : > { %v1547_v4 = vmul.f32 %v1545_v1, %v1522_v46 }
 0x8bb   : > { %v1548_v6 = vmul.f32 %v1546_v3, %v1537_v50 }
 0x8bc   : > { %v1549_v8 = vadd.f32 -0.28449672, %v1547_v4 }
 0x8bd   : > { %v1550_v9 = vadd.f32 -0.28449672, %v1548_v6 }
 0x8be   : > { %v1551_v10 = vmul.f32 %v1549_v8, %v1522_v46 }
 0x8bf   : > { %v1552_v11 = vmul.f32 %v1550_v9, %v1537_v50 }
 0x8c0   : > { %v1553_v12 = vadd.f32 0.2548296, %v1551_v10 }
 0x8c1   : > { %v1554_v13 = vadd.f32 0.2548296, %v1552_v11 }
 0x8c2   : > { %v1555_v63 = vmul.f32 %v1553_v12, %v1522_v46 }
 0x8c3   : > { %v1556_v15 = vmul.f32 %v1554_v13, %v1537_v50 }
 0x8c4   : > { %v1565_v0 = vmul.f32 %v2233_v14, %v1555_v63 }
 0x8c5   : > { %v1566_v17 = vmul.f32 %v2235_v16, %v1556_v15 }
 0x8c6   : > { %v1567_v18 = vsub.f32 1.0, %v1565_v0 }
 0x8c7   : > { %v1568_v19 = vsub.f32 1.0, %v1566_v17 }
 0x8c8   : > { %v1571_v21 = vsub.f32 0.0, %v1567_v18 }
 0x8c9   : > { %v1572_v22 = vsub.f32 0.0, %v1568_v19 }
 0x8ca   : > { %v1573_v24 = vsel %vm1569_vm5, %v1567_v18, %v1571_v21 }
 0x8cb   : > { %v1575_v26 = vadd.f32 1.0, %v1573_v24  ;;  %v1574_v23 = vsel %vm1570_vm6, %v1568_v19, %v1572_v22 }
 0x8cc   : > { %v1576_v28 = vadd.f32 1.0, %v1574_v23 }
 0x8cd   : > { %v1577_v29 = vmul.f32 %v1575_v26, %v1499_v25 }
 0x8ce   : > { %v1578_v30 = vmul.f32 %v1576_v28, %v1500_v27 }
 0x8cf   : > { %1627 = vmatmul.f32.vlgmr.msrb.gmra.mxu2 %v1577_v29 }
 0x8d0   : > { %1647 = vmatmul.f32.vlgmr.msrb.gmra.mxu3 %v1578_v30 }
 0x952   : > { %v1628_v31 = vpop.f32.mrf.mxu2 }
 0x953   : > { %v1648_v32 = vpop.f32.mrf.mxu3 }
 0x954   : > { %v1649_v33 = vadd.f32 %v1648_v32, %v1628_v31 }
 0x956   : > { %v1651_v7 = vadd.f32 %v1649_v33, %v3017_v55  ;;  %1661 = sbr.rel (%p2051_p12) target bundleno = 2934 (0xb76), region = 120 }
 0x958   : > { %v1656_v56 = vadd.f32 %v2205_v60, %v1651_v7 }
 0x95a   : > { %1657 = vst [vmem:[#allocation2] sm:$0xff] %v1656_v56 }
 0x95b   : > { %vm1664_vm7 = vcmask 1047559   ;;  %v1710_v34 = vld [vmem:[#allocation4 + $0x78] sm:$0xff]  ;;  %v1709_v40 = vld [vmem:[#allocation4 + $0x70] sm:$0xff]  ;;  %v1708_v55 = vld [vmem:[#allocation4 + $0x68] sm:$0xff]  ;;  %vm1735_vm11 = vcmask 1040384  }
 0x95c   : > { %v1665_v57 = vsel %vm1664_vm7, %v1656_v56, 0.0  ;;  %1714 = vmatpush.msra.mxu0 %v1710_v34  ;;  %v1707_v41 = vld [vmem:[#allocation4 + $0x60] sm:$0xff]  ;;  %v1706_v42 = vld [vmem:[#allocation4 + $0x58] sm:$0xff]  ;;  %v1705_v43 = vld [vmem:[#allocation4 + $0x50] sm:$0xff] }
 0x95d   : > { %1666 = vadd.xlane.f32.xlu0 %v1665_v57  ;;  %v1704_v44 = vld [vmem:[#allocation4 + $0x48] sm:$0xff]  ;;  %v1703_v45 = vld [vmem:[#allocation4 + $0x40] sm:$0xff]  ;;  %v1702_v46 = vld [vmem:[#allocation4 + $0x38] sm:$0xff] }
 0x95e   : > { %1715 = vmatpush.msra.mxu0 %v1709_v40  ;;  %v1701_v47 = vld [vmem:[#allocation4 + $0x30] sm:$0xff]  ;;  %v1700_v48 = vld [vmem:[#allocation4 + $0x28] sm:$0xff]  ;;  %v1699_v49 = vld [vmem:[#allocation4 + $0x20] sm:$0xff] }
 0x95f   : > { %v1698_v50 = vld [vmem:[#allocation4 + $0x18] sm:$0xff]  ;;  %v1697_v51 = vld [vmem:[#allocation4 + $0x10] sm:$0xff]  ;;  %v1696_v52 = vld [vmem:[#allocation4 + $0x8] sm:$0xff] }
 0x960   : > { %1716 = vmatpush.msra.mxu0 %v1708_v55  ;;  %v1695_v53 = vld [vmem:[#allocation4] sm:$0xff]  ;;  %v2236_v5 = vld [vmem:[%s3311_s21] ss:$0 sm:$0xff] }
 0x962   : > { %1717 = vmatpush.msra.mxu0 %v1707_v41 }
 0x964   : > { %1718 = vmatpush.msra.mxu0 %v1706_v42 }
 0x966   : > { %1719 = vmatpush.msra.mxu0 %v1705_v43 }
 0x968   : > { %1720 = vmatpush.msra.mxu0 %v1704_v44 }
 0x96a   : > { %1721 = vmatpush.msra.mxu0 %v1703_v45 }
 0x96c   : > { %1722 = vmatpush.msra.mxu0 %v1702_v46 }
 0x96e   : > { %1723 = vmatpush.msra.mxu0 %v1701_v47 }
 0x970   : > { %1724 = vmatpush.msra.mxu0 %v1700_v48 }
 0x972   : > { %1725 = vmatpush.msra.mxu0 %v1699_v49 }
 0x974   : > { %1726 = vmatpush.msra.mxu0 %v1698_v50 }
 0x976   : > { %1727 = vmatpush.msra.mxu0 %v1697_v51 }
 0x978   : > { %1728 = vmatpush.msra.mxu0 %v1696_v52 }
 0x97a   : > { %1729 = vmatpush.msra.mxu0 %v1695_v53 }
 0x9d0   : > { %v1667_v35 = vpop.xlane.xlu0 %1666 }
 0x9d1   : > { %v1668_v36 = vmul.f32 %v1667_v35, %v2893_v20 }
 0x9d3   : > { %v1669_v37 = vsub.f32 %v1656_v56, %v1668_v36 }
 0x9d5   : > { %v1670_v38 = vmul.f32 %v1669_v37, %v1669_v37 }
 0x9d7   : > { %v1671_v39 = vsel %vm1664_vm7, %v1670_v38, 0.0 }
 0x9d8   : > { %1672 = vadd.xlane.f32.xlu0 %v1671_v39 }
 0xa4b   : > { %v1673_v54 = vpop.xlane.xlu0 %1672 }
 0xa4c   : > { %v1674_v58 = vmul.f32 %v1673_v54, %v2893_v20  ;;  %v2237_v20 = vld [vmem:[%s3312_s16] ss:$0 sm:$0xff] }
 0xa4e   : > { %v1675_v59 = vadd.f32 1e-05, %v1674_v58 }
 0xa50   : > { %2238 = vrsqrt.f32 %v1675_v59  ;;  %vm1682_vm9 = vweird.f32 %v1675_v59 }
 0xa56   : > { %v2239_v61 = vpop.eup %2238 }
 0xa57   : > { %v1677_v62 = vmul.f32 %v2239_v61, %v1675_v59  ;;  %vm1683_vm8 = vweird.f32 %v2239_v61 }
 0xa58   : > { %vm1684_vm10 = vmor %vm1682_vm9, %vm1683_vm8 }
 0xa59   : > { %v1678_v1 = vmul.f32 %v2239_v61, %v1677_v62 }
 0xa5b   : > { %v1679_v2 = vmul.f32 0.5, %v1678_v1 }
 0xa5d   : > { %v1680_v3 = vsub.f32 1.5, %v1679_v2 }
 0xa5f   : > { %v1681_v4 = vmul.f32 %v2239_v61, %v1680_v3 }
 0xa61   : > { %v1685_v6 = vsel %vm1684_vm10, %v2239_v61, %v1681_v4 }
 0xa62   : > { %v1686_v8 = vmul.f32 %v1685_v6, %v1669_v37 }
 0xa64   : > { %v1690_v9 = vmul.f32 %v2236_v5, %v1686_v8 }
 0xa66   : > { %v1694_v10 = vadd.f32 %v2237_v20, %v1690_v9 }
 0xa68   : > { %v1712_v11 = vrot.slane %v1694_v10, 7 }
 0xa6a   : > { %1730 = vmatmul.f32.vlgmr.msra.gmra.mxu0 %v1712_v11 }
 0xae7   : > { %v1731_v12 = vpop.f32.mrf.mxu0 }
 0xae8   : > { %v1734_v13 = vmul.f32 %v1731_v12, %v1731_v12 }
 0xaea   : > { %v1736_v63 = vsel %vm1735_vm11, %v1734_v13, 0.0 }
 0xaeb   : > { %1737 = vadd.xlane.f32.xlu1 %v1736_v63 }
 0xb5e   : > { %v1738_v14 = vpop.xlane.xlu1 %1737 }
 0xb5f   : > { %v1739_v15 = vmax.f32 %v1738_v14, 1e-24 }
 0xb61   : > { %2240 = vrsqrt.f32 %v1739_v15  ;;  %vm1746_vm13 = vweird.f32 %v1739_v15 }
 0xb67   : > { %v2241_v16 = vpop.eup %2240 }
 0xb68   : > { %v1741_v0 = vmul.f32 %v2241_v16, %v1739_v15  ;;  %vm1747_vm12 = vweird.f32 %v2241_v16 }
 0xb69   : > { %vm1748_vm14 = vmor %vm1746_vm13, %vm1747_vm12 }
 0xb6a   : > { %v1742_v17 = vmul.f32 %v2241_v16, %v1741_v0 }
 0xb6c   : > { %v1743_v18 = vmul.f32 0.5, %v1742_v17 }
 0xb6e   : > { %v1744_v19 = vsub.f32 1.5, %v1743_v18 }
 0xb70   : > { %v1745_v21 = vmul.f32 %v2241_v16, %v1744_v19 }
 0xb72   : > { %v1749_v22 = vsel %vm1748_vm14, %v2241_v16, %v1745_v21 }
 0xb73   : > { %v1750_v24 = vmul.f32 %v1749_v22, %v1731_v12 }
 0xb75   : > { %1751 = vst [vmem:[%s2878_s25] sm:$0x1] %v1750_v24 }
 0xb76 PF: > { %s3313_s9 = sld [smem:[#allocation23_spill]]  ;;  %s1763_s6 = sshll.u32 %s2878_s25, 4  ;;  %s1764_s6 = int_to_ptr.vmem [resolvable:$true] %s1763_s6 }
 0xb77   : > { %s3314_s1 = sld [smem:[#allocation51_spill]]  ;;  %s3317_s14 = sand.u32 1, %s2486_s28  }
 0xb78   : > { %s1753_s3 = scalar_lea.sflag [#allocation6], %s3317_s14 }
 0xb7d   : > { %s3315_s12 = smov %s3314_s1  ;;  %s1761_s5 = scalar_lea.hbm %s3314_s1, %s3313_s9 }
 0xb7e   : > { %s1765_s8 = sshll.u32 %s1761_s5, 4  ;;  %s2412_s27 = scalar_lea.hbm %s3315_s12, 2  ;;  %s1766_s8 = int_to_ptr.hbm [resolvable:$true] %s1765_s8 }
 0xb7f   : > { %s2406_s24 = sshra.s32 %s1766_s8, 4  ;;  %s2407_s24 = int_to_ptr.hbm [resolvable:$true] %s2406_s24 }
 0xb80   : > { %s2408_s29 = scalar_lea.hbm %s2407_s24, 1  ;;  %p2413_p3 = scmp.lt.s32.totalorder %s2407_s24, %s3315_s12 }
 0xb81   : > { %p2409_p13 = scmp.ne.s32.totalorder %s2407_s24, %s2408_s29  ;;  %p2414_p4 = scmp.lt.s32.totalorder %s2412_s27, %s2408_s29 }
 0xb83   : > { %p2410_p1 = pnand %p2409_p13, %p2762_p0  ;;  %p2415_p6 = por %p2414_p4, %p2413_p3 }
 0xb85   : > { %p2411_p2 = pneg %p2410_p1 }
 0xb87   : > { %p2416_p8 = pnand %p2415_p6, %p2411_p2 }
 0xb89   : > { %2419 = shalt.err (!%p2416_p8)
}
 0xb8a   : > { %2073 = dma.vmem_to_hbm [thread:$0]  (%p2762_p0), %s1764_s6, 16, %s1766_s8, %s1753_s3  }
 0xb8b PF: > { %s3318_s25 = sld [smem:[#allocation26_spill]] }
 0xb8c   : > { %s3319_s0 = sld [smem:[#allocation18_spill]] }
 0xb91   : > { %p2099_p10 = scmp.ge.s32.totalorder %s3318_s25, 2 }
 0xb92   : > { %s1777_s18 = sand.u32 1, %s3319_s0  }
 0xb93   : > { %p2093_p7 = pnand %p2099_p10, %p2770_p5  ;;  %s1778_s15 = scalar_lea.sflag [#allocation6], %s1777_s18 }
 0xb95   : > { %p2094_p9 = pneg %p2093_p7 }
 0xb97   : > { %2477 = dma.done.wait (%p2094_p9), %s1778_s15, 16  }
 0xb98   : > { %2479 = vsyncadd (%p2094_p9), %s1778_s15, 4294967280  ;;  %s38_s2 = sadd.s32 1, %s3318_s25   ;;  %s3321_s4 = sld [smem:[#allocation19_spill]] }
 0xb99   : > { %p35_p11 = scmp.ge.s32.totalorder %s38_s2, 6   ;;  %s3322_s29 = sld [smem:[#allocation30_spill]] }
 0xb9a   : > { %s3323_s30 = sld [smem:[#allocation20_spill]]  ;;  %s3330_s27 = smov %s2486_s28 }
 0xb9b   : > { %s3324_s0 = sld [smem:[#allocation21_spill]] }
 0xb9c   : > { %s3325_s19 = sld [smem:[#allocation29_spill]]  ;;  %37 = sbr.rel (!%p35_p11) target bundleno = 32 (0x20), region = 215 }
 0xb9d   : > { %s3326_s1 = sld [smem:[#allocation24_spill]] }
 0xb9e   : > { %s3327_s20 = sld [smem:[#allocation25_spill]]  ;;  %s3331_s28 = smov %s3321_s4 }
 0xb9f   : > { %s3328_s21 = sld [smem:[#allocation27_spill]] }
 0xba0   : > { %s3329_s22 = sld [smem:[#allocation28_spill]] }
 0xba1   :  { %1783 = vsyncpa [#allocation5], 1 }
 0xba2   :  { %1785 = vsyncpa [#allocation5 + $0x1], 1 }
 0xba3   :  { %1786 = vsyncpa [#allocation8], 1 }
 0xba4   :  { %1788 = vsyncpa [#allocation8 + $0x1], 1 }
 0xba5   :  { %1789 = vsyncpa [#allocation11], 1 }
 0xba6   :  { %1791 = vsyncpa [#allocation11 + $0x1], 1 }
 0xba7   :  { %1792 = vsyncpa [#allocation6], 1 }
 0xba8   :  { %1794 = vsyncpa [#allocation6 + $0x1], 1 }

</bundles_post_ra>
